<compile_context>
chip_gen: v6e
topology: v6e:2x2x1
jax: 0.10.0
libtpu: 0.0.40
codegen_flags: <defaults>
</compile_context>

<pallas_src>
import functools

import numpy as np
import jax
import jax.numpy as jnp
from jax import lax
from jax.experimental import pallas as pl
from jax.experimental.pallas import tpu as pltpu

_EPS = 1e-5          # nn.LayerNorm default eps
_INV_SQRT2 = 0.7071067811865475


def _layer_norm_feats(x, gamma, beta):
    # x: (C, H, W); normalize over H (== n_feats), exactly CNNLayerNorm:
    # transpose(2,3) -> LayerNorm(n_feats) -> transpose back  (biased variance).
    mu = jnp.mean(x, axis=1, keepdims=True)
    var = jnp.mean((x - mu) ** 2, axis=1, keepdims=True)
    xn = (x - mu) * lax.rsqrt(var + _EPS)
    return xn * gamma + beta                       # gamma/beta: (H, 1) broadcast


def _gelu_exact(x):
    # matches torch.nn.functional.gelu default (erf form)
    return 0.5 * x * (1.0 + lax.erf(x * _INV_SQRT2))


def _conv2d_same(z, pad_ref, slab_ref, conv_ref, w_ref, b_ref, *, K, p):
    # z: (Ci, H, W) conv input (registers); pad_ref: (Ci, H+2p, W+2p) zero-bordered.
    # w_ref: (Co, K*K*Ci) with (kh, kw, ci) minor ordering;  b_ref: (Co, 1).
    Ci, H, W = z.shape
    Wp = W + 2 * p

    # single store of the conv input into the (already zero-framed) interior
    pad_ref[:, p:p + H, p:p + W] = z

    w_mat = w_ref[...]                                       # (Co, K*K*Ci)
    bias = b_ref[...]                                        # (Co, 1)

    def row_body(h, carry):
        # K input rows covering output row h, all channels, full padded width
        region = pad_ref[:, pl.ds(h, K), :]                  # (Ci, K, Wp)
        # im2col slab for this output row, rows ordered (kh, kw, ci)
        for t in range(K * K):
            kh, kw = divmod(t, K)
            slab_ref[t * Ci:(t + 1) * Ci, :] = region[:, kh, kw:kw + W]
        # fused conv: one MXU matmul per output row (contraction = K*K*Ci)
        row = jnp.dot(w_mat, slab_ref[...],
                      preferred_element_type=jnp.float32) + bias   # (Co, W)
        conv_ref[:, pl.ds(h, 1), :] = row[:, None, :]
        return carry

    lax.fori_loop(0, H, row_body, 0)


def _residual_cnn_kernel(x_ref, g1_ref, bt1_ref, w1_ref, b1_ref,
                         g2_ref, bt2_ref, w2_ref, b2_ref,
                         o_ref, pad_ref, slab_ref, conv_ref, *, K, p):
    C, Hp, Wp = pad_ref.shape
    H, W = Hp - 2 * p, Wp - 2 * p

    # Zero only the padding frame, once per grid step (interior is rewritten by
    # each conv).  Per-step (not program_id==0-gated) so it is correct when the
    # "parallel" batch axis is split across TensorCores (each has its own scratch).
    zrow = jnp.zeros((C, p, Wp), jnp.float32)
    zcol = jnp.zeros((C, Hp, p), jnp.float32)
    pad_ref[:, :p, :] = zrow
    pad_ref[:, p + H:, :] = zrow
    pad_ref[:, :, :p] = zcol
    pad_ref[:, :, p + W:] = zcol

    x = x_ref[0].astype(jnp.float32)                         # (C, H, W)

    # layer_norm1 -> gelu -> dropout1 (identity at inference) -> cnn1
    # TODO(synk): dropout omitted (inference-mode identity)
    z = _gelu_exact(_layer_norm_feats(x, g1_ref[...], bt1_ref[...]))
    _conv2d_same(z, pad_ref, slab_ref, conv_ref, w1_ref, b1_ref, K=K, p=p)

    # layer_norm2 -> gelu -> dropout2 (identity) -> cnn2
    y = conv_ref[...]
    z = _gelu_exact(_layer_norm_feats(y, g2_ref[...], bt2_ref[...]))
    _conv2d_same(z, pad_ref, slab_ref, conv_ref, w2_ref, b2_ref, K=K, p=p)

    # residual: re-read the VMEM-resident input block instead of keeping it live
    o_ref[0] = (conv_ref[...] + x_ref[0].astype(jnp.float32)).astype(o_ref.dtype)


def residual_cnn(x_nchw, params, *, kernel):
    """Pallas forward of ResidualCNN. x_nchw: (N, C, n_feats, time), stride=1."""
    N, C, H, W = x_nchw.shape
    K = kernel
    assert K % 2 == 1, "same-padding conv expects odd kernel size"
    p = K // 2
    Co = params["w1"].shape[0]
    assert Co == C, "residual add requires out_channels == in_channels"

    f32 = jnp.float32
    g1 = params["gamma1"].reshape(H, 1).astype(f32)
    bt1 = params["beta1"].reshape(H, 1).astype(f32)
    g2 = params["gamma2"].reshape(H, 1).astype(f32)
    bt2 = params["beta2"].reshape(H, 1).astype(f32)
    # torch conv weight (Co, Ci, K, K) -> (Co, K*K*Ci) with (kh, kw, ci) minor order
    w1 = jnp.transpose(params["w1"], (0, 2, 3, 1)).reshape(Co, K * K * C).astype(f32)
    w2 = jnp.transpose(params["w2"], (0, 2, 3, 1)).reshape(Co, K * K * Co).astype(f32)
    b1 = params["b1"].reshape(Co, 1).astype(f32)
    b2 = params["b2"].reshape(Co, 1).astype(f32)

    def fixed(shape):
        return pl.BlockSpec(shape, lambda b: (0, 0))         # all params are rank-2

    grid_spec = pltpu.PrefetchScalarGridSpec(
        num_scalar_prefetch=0,
        grid=(N,),
        in_specs=[
            pl.BlockSpec((1, C, H, W), lambda b: (b, 0, 0, 0)),
            fixed((H, 1)), fixed((H, 1)),
            fixed((Co, K * K * C)), fixed((Co, 1)),
            fixed((H, 1)), fixed((H, 1)),
            fixed((Co, K * K * Co)), fixed((Co, 1)),
        ],
        out_specs=pl.BlockSpec((1, C, H, W), lambda b: (b, 0, 0, 0)),
        scratch_shapes=[
            pltpu.VMEM((C, H + 2 * p, W + 2 * p), jnp.float32),   # padded conv input
            pltpu.VMEM((K * K * C, W), jnp.float32),              # per-row im2col slab
            pltpu.VMEM((C, H, W), jnp.float32),                   # conv output
        ],
    )

    # TODO(synk): for production ASR shapes (n_feats~128, time >> 1000) add a
    # time-tiled grid axis with a 2*p-column halo so each block + scratch stays
    # within VMEM (mandatory on v7x with 64 MiB); blocks here fit the test shapes.
    out = pl.pallas_call(
        functools.partial(_residual_cnn_kernel, K=K, p=p),
        out_shape=jax.ShapeDtypeStruct((N, C, H, W), x_nchw.dtype),
        grid_spec=grid_spec,
        compiler_params=pltpu.CompilerParams(
            dimension_semantics=("parallel",),     # independent images -> both TCs on v7x
            vmem_limit_bytes=32 * 1024 * 1024),
    )(x_nchw, g1, bt1, w1, b1, g2, bt2, w2, b2)
    return out


# ---------------- pure-JAX reference (for correctness check) ----------------
def residual_cnn_ref(x, params, *, kernel):
    K = kernel
    p = K // 2

    def cnn_ln(x, g, b):
        xt = jnp.transpose(x, (0, 1, 3, 2))                    # (N, C, W, H)
        mu = jnp.mean(xt, -1, keepdims=True)
        var = jnp.mean((xt - mu) ** 2, -1, keepdims=True)
        xt = (xt - mu) * lax.rsqrt(var + _EPS) * g + b
        return jnp.transpose(xt, (0, 1, 3, 2))

    def gelu(x):
        return 0.5 * x * (1.0 + lax.erf(x * _INV_SQRT2))

    def conv(x, w, b):
        y = lax.conv_general_dilated(
            x, w, window_strides=(1, 1), padding=[(p, p), (p, p)],
            dimension_numbers=("NCHW", "OIHW", "NCHW"))
        return y + b[None, :, None, None]

    residual = x
    y = gelu(cnn_ln(x, params["gamma1"], params["beta1"]))
    y = conv(y, params["w1"], params["b1"])
    y = gelu(cnn_ln(y, params["gamma2"], params["beta2"]))
    y = conv(y, params["w2"], params["b2"])
    return y + residual


if __name__ == "__main__":
    # small shapes consistent with the module: NCHW = (batch, channels, n_feats, time)
    N, C, n_feats, T = 2, 4, 16, 16
    K = 3  # kernel size, stride=1, dropout has no effect at inference

    key = jax.random.PRNGKey(0)
    kx, k1, k2, k3, k4, k5, k6, k7, k8 = jax.random.split(key, 9)
    x = jax.random.normal(kx, (N, C, n_feats, T), jnp.float32)

    params = dict(
        gamma1=1.0 + 0.1 * jax.random.normal(k1, (n_feats,), jnp.float32),
        beta1=0.05 * jax.random.normal(k2, (n_feats,), jnp.float32),
        gamma2=1.0 + 0.1 * jax.random.normal(k3, (n_feats,), jnp.float32),
        beta2=0.05 * jax.random.normal(k4, (n_feats,), jnp.float32),
        w1=0.1 * jax.random.normal(k5, (C, C, K, K), jnp.float32),
        b1=0.02 * jax.random.normal(k6, (C,), jnp.float32),
        w2=0.1 * jax.random.normal(k7, (C, C, K, K), jnp.float32),
        b2=0.02 * jax.random.normal(k8, (C,), jnp.float32),
    )

    out = jax.block_until_ready(residual_cnn(x, params, kernel=K))
    ref = jax.block_until_ready(residual_cnn_ref(x, params, kernel=K))

    assert out.shape == x.shape and out.dtype == x.dtype
    np.testing.assert_allclose(np.asarray(out), np.asarray(ref),
                               atol=1e-4, rtol=1e-4)
    print("KERNEL_OK")
</pallas_src>

<mosaic_0001>
module attributes {stable_mosaic.version = 11 : i64} {
  func.func @_residual_cnn_kernel(%arg0: i32, %arg1: memref<1x4x16x16xf32, #tpu.memory_space<vmem>>, %arg2: memref<16x1xf32, #tpu.memory_space<vmem>>, %arg3: memref<16x1xf32, #tpu.memory_space<vmem>>, %arg4: memref<4x36xf32, #tpu.memory_space<vmem>>, %arg5: memref<4x1xf32, #tpu.memory_space<vmem>>, %arg6: memref<16x1xf32, #tpu.memory_space<vmem>>, %arg7: memref<16x1xf32, #tpu.memory_space<vmem>>, %arg8: memref<4x36xf32, #tpu.memory_space<vmem>>, %arg9: memref<4x1xf32, #tpu.memory_space<vmem>>, %arg10: memref<1x4x16x16xf32, #tpu.memory_space<vmem>>, %arg11: memref<4x18x18xf32, #tpu.memory_space<vmem>>, %arg12: memref<36x16xf32, #tpu.memory_space<vmem>>, %arg13: memref<4x16x16xf32, #tpu.memory_space<vmem>>) attributes {dimension_semantics = [#tpu.dimension_semantics<parallel>], iteration_bounds = array<i64: 2>, scalar_prefetch = 0 : i64, scratch_operands = 3 : i64, tpu.core_type = #tpu.core_type<tc>, window_params = [{transform_indices = @transform_0, window_bounds = array<i64: 1, 4, 16, 16>}, {pipeline_mode = #tpu.pipeline_mode<synchronous>, transform_indices = @transform_1, window_bounds = array<i64: 16, 1>}, {pipeline_mode = #tpu.pipeline_mode<synchronous>, transform_indices = @transform_2, window_bounds = array<i64: 16, 1>}, {pipeline_mode = #tpu.pipeline_mode<synchronous>, transform_indices = @transform_3, window_bounds = array<i64: 4, 36>}, {pipeline_mode = #tpu.pipeline_mode<synchronous>, transform_indices = @transform_4, window_bounds = array<i64: 4, 1>}, {pipeline_mode = #tpu.pipeline_mode<synchronous>, transform_indices = @transform_5, window_bounds = array<i64: 16, 1>}, {pipeline_mode = #tpu.pipeline_mode<synchronous>, transform_indices = @transform_6, window_bounds = array<i64: 16, 1>}, {pipeline_mode = #tpu.pipeline_mode<synchronous>, transform_indices = @transform_7, window_bounds = array<i64: 4, 36>}, {pipeline_mode = #tpu.pipeline_mode<synchronous>, transform_indices = @transform_8, window_bounds = array<i64: 4, 1>}, {transform_indices = @transform_9, window_bounds = array<i64: 1, 4, 16, 16>}]} {
    %cst = arith.constant 0.000000e+00 : f32
    %0 = vector.broadcast %cst : f32 to vector<4x1x18xf32>
    %cst_0 = arith.constant 0.000000e+00 : f32
    %1 = vector.broadcast %cst_0 : f32 to vector<4x18x1xf32>
    %c0 = arith.constant 0 : index
    %c0_1 = arith.constant 0 : index
    %c0_2 = arith.constant 0 : index
    %2 = vector.load %arg11[%c0, %c0_1, %c0_2] : memref<4x18x18xf32, #tpu.memory_space<vmem>>, vector<4x1x18xf32>
    tpu.vector_store %arg11[%c0, %c0_1, %c0_2], %0 {strides = array<i32>} : memref<4x18x18xf32, #tpu.memory_space<vmem>>, vector<4x1x18xf32>,
    %c0_3 = arith.constant 0 : index
    %c17 = arith.constant 17 : index
    %c0_4 = arith.constant 0 : index
    %3 = vector.load %arg11[%c0_3, %c17, %c0_4] : memref<4x18x18xf32, #tpu.memory_space<vmem>>, vector<4x1x18xf32>
    tpu.vector_store %arg11[%c0_3, %c17, %c0_4], %0 {strides = array<i32>} : memref<4x18x18xf32, #tpu.memory_space<vmem>>, vector<4x1x18xf32>,
    %c0_5 = arith.constant 0 : index
    %c0_6 = arith.constant 0 : index
    %c0_7 = arith.constant 0 : index
    %4 = vector.load %arg11[%c0_5, %c0_6, %c0_7] : memref<4x18x18xf32, #tpu.memory_space<vmem>>, vector<4x18x1xf32>
    tpu.vector_store %arg11[%c0_5, %c0_6, %c0_7], %1 {strides = array<i32>} : memref<4x18x18xf32, #tpu.memory_space<vmem>>, vector<4x18x1xf32>,
    %c0_8 = arith.constant 0 : index
    %c0_9 = arith.constant 0 : index
    %c17_10 = arith.constant 17 : index
    %5 = vector.load %arg11[%c0_8, %c0_9, %c17_10] : memref<4x18x18xf32, #tpu.memory_space<vmem>>, vector<4x18x1xf32>
    tpu.vector_store %arg11[%c0_8, %c0_9, %c17_10], %1 {strides = array<i32>} : memref<4x18x18xf32, #tpu.memory_space<vmem>>, vector<4x18x1xf32>,
    %c0_11 = arith.constant 0 : index
    %c0_12 = arith.constant 0 : index
    %c0_13 = arith.constant 0 : index
    %c0_14 = arith.constant 0 : index
    %6 = vector.load %arg1[%c0_11, %c0_12, %c0_13, %c0_14] : memref<1x4x16x16xf32, #tpu.memory_space<vmem>>, vector<1x4x16x16xf32>
    %7 = vector.shape_cast %6 : vector<1x4x16x16xf32> to vector<4x16x16xf32>
    %c0_15 = arith.constant 0 : index
    %c0_16 = arith.constant 0 : index
    %8 = vector.load %arg2[%c0_15, %c0_16] : memref<16x1xf32, #tpu.memory_space<vmem>>, vector<16x1xf32>
    %c0_17 = arith.constant 0 : index
    %c0_18 = arith.constant 0 : index
    %9 = vector.load %arg3[%c0_17, %c0_18] : memref<16x1xf32, #tpu.memory_space<vmem>>, vector<16x1xf32>
    %cst_19 = arith.constant dense<0.000000e+00> : vector<4x16xf32>
    %10 = vector.multi_reduction <add>, %7, %cst_19 [1] : vector<4x16x16xf32> to vector<4x16xf32>
    %11 = vector.shape_cast %10 : vector<4x16xf32> to vector<4x1x16xf32>
    %cst_20 = arith.constant 1.600000e+01 : f32
    %12 = vector.broadcast %cst_20 : f32 to vector<4x1x16xf32>
    %13 = arith.divf %11, %12 : vector<4x1x16xf32>
    %14 = vector.broadcast %13 : vector<4x1x16xf32> to vector<4x16x16xf32>
    %15 = arith.subf %7, %14 : vector<4x16x16xf32>
    %16 = arith.mulf %15, %15 : vector<4x16x16xf32>
    %cst_21 = arith.constant dense<0.000000e+00> : vector<4x16xf32>
    %17 = vector.multi_reduction <add>, %16, %cst_21 [1] : vector<4x16x16xf32> to vector<4x16xf32>
    %18 = vector.shape_cast %17 : vector<4x16xf32> to vector<4x1x16xf32>
    %cst_22 = arith.constant 1.600000e+01 : f32
    %19 = vector.broadcast %cst_22 : f32 to vector<4x1x16xf32>
    %20 = arith.divf %18, %19 : vector<4x1x16xf32>
    %21 = vector.broadcast %13 : vector<4x1x16xf32> to vector<4x16x16xf32>
    %22 = arith.subf %7, %21 : vector<4x16x16xf32>
    %cst_23 = arith.constant 9.99999974E-6 : f32
    %23 = vector.broadcast %cst_23 : f32 to vector<4x1x16xf32>
    %24 = arith.addf %20, %23 : vector<4x1x16xf32>
    %25 = math.rsqrt %24 : vector<4x1x16xf32>
    %26 = vector.broadcast %25 : vector<4x1x16xf32> to vector<4x16x16xf32>
    %27 = arith.mulf %22, %26 : vector<4x16x16xf32>
    %28 = vector.shape_cast %8 : vector<16x1xf32> to vector<1x16x1xf32>
    %29 = vector.broadcast %28 : vector<1x16x1xf32> to vector<4x16x16xf32>
    %30 = arith.mulf %27, %29 : vector<4x16x16xf32>
    %31 = vector.shape_cast %9 : vector<16x1xf32> to vector<1x16x1xf32>
    %32 = vector.broadcast %31 : vector<1x16x1xf32> to vector<4x16x16xf32>
    %33 = arith.addf %30, %32 : vector<4x16x16xf32>
    %cst_24 = arith.constant 5.000000e-01 : f32
    %34 = vector.broadcast %cst_24 : f32 to vector<4x16x16xf32>
    %35 = arith.mulf %34, %33 : vector<4x16x16xf32>
    %cst_25 = arith.constant 0.707106769 : f32
    %36 = vector.broadcast %cst_25 : f32 to vector<4x16x16xf32>
    %37 = arith.mulf %33, %36 : vector<4x16x16xf32>
    %38 = math.erf %37 : vector<4x16x16xf32>
    %cst_26 = arith.constant 1.000000e+00 : f32
    %39 = vector.broadcast %cst_26 : f32 to vector<4x16x16xf32>
    %40 = arith.addf %39, %38 : vector<4x16x16xf32>
    %41 = arith.mulf %35, %40 : vector<4x16x16xf32>
    %c0_27 = arith.constant 0 : index
    %c1 = arith.constant 1 : index
    %c1_28 = arith.constant 1 : index
    %42 = vector.load %arg11[%c0_27, %c1, %c1_28] : memref<4x18x18xf32, #tpu.memory_space<vmem>>, vector<4x16x16xf32>
    tpu.vector_store %arg11[%c0_27, %c1, %c1_28], %41 {strides = array<i32>} : memref<4x18x18xf32, #tpu.memory_space<vmem>>, vector<4x16x16xf32>,
    %c0_29 = arith.constant 0 : index
    %c0_30 = arith.constant 0 : index
    %43 = vector.load %arg4[%c0_29, %c0_30] : memref<4x36xf32, #tpu.memory_space<vmem>>, vector<4x36xf32>
    %c0_31 = arith.constant 0 : index
    %c0_32 = arith.constant 0 : index
    %44 = vector.load %arg5[%c0_31, %c0_32] : memref<4x1xf32, #tpu.memory_space<vmem>>, vector<4x1xf32>
    %c0_i32 = arith.constant 0 : i32
    %c16_i32 = arith.constant 16 : i32
    %45 = arith.addi %c0_i32, %c16_i32 : i32
    %c1_i32 = arith.constant 1 : i32
    scf.for %arg14 = %c0_i32 to %45 step %c1_i32  : i32 {
      %c0_71 = arith.constant 0 : index
      %92 = arith.index_cast %arg14 : i32 to index
      %c0_72 = arith.constant 0 : index
      %93 = vector.load %arg11[%c0_71, %92, %c0_72] : memref<4x18x18xf32, #tpu.memory_space<vmem>>, vector<4x3x18xf32>
      %94 = vector.extract_strided_slice %93 {offsets = [0, 0, 0], sizes = [4, 1, 16], strides = [1, 1, 1]} : vector<4x3x18xf32> to vector<4x1x16xf32>
      %95 = vector.shape_cast %94 : vector<4x1x16xf32> to vector<4x16xf32>
      %c0_73 = arith.constant 0 : index
      %c0_74 = arith.constant 0 : index
      %96 = vector.load %arg12[%c0_73, %c0_74] : memref<36x16xf32, #tpu.memory_space<vmem>>, vector<4x16xf32>
      tpu.vector_store %arg12[%c0_73, %c0_74], %95 {strides = array<i32>} : memref<36x16xf32, #tpu.memory_space<vmem>>, vector<4x16xf32>,
      %97 = vector.extract_strided_slice %93 {offsets = [0, 0, 1], sizes = [4, 1, 16], strides = [1, 1, 1]} : vector<4x3x18xf32> to vector<4x1x16xf32>
      %98 = vector.shape_cast %97 : vector<4x1x16xf32> to vector<4x16xf32>
      %c4 = arith.constant 4 : index
      %c0_75 = arith.constant 0 : index
      %99 = vector.load %arg12[%c4, %c0_75] : memref<36x16xf32, #tpu.memory_space<vmem>>, vector<4x16xf32>
      tpu.vector_store %arg12[%c4, %c0_75], %98 {strides = array<i32>} : memref<36x16xf32, #tpu.memory_space<vmem>>, vector<4x16xf32>,
      %100 = vector.extract_strided_slice %93 {offsets = [0, 0, 2], sizes = [4, 1, 16], strides = [1, 1, 1]} : vector<4x3x18xf32> to vector<4x1x16xf32>
      %101 = vector.shape_cast %100 : vector<4x1x16xf32> to vector<4x16xf32>
      %c8 = arith.constant 8 : index
      %c0_76 = arith.constant 0 : index
      %102 = vector.load %arg12[%c8, %c0_76] : memref<36x16xf32, #tpu.memory_space<vmem>>, vector<4x16xf32>
      tpu.vector_store %arg12[%c8, %c0_76], %101 {strides = array<i32>} : memref<36x16xf32, #tpu.memory_space<vmem>>, vector<4x16xf32>,
      %103 = vector.extract_strided_slice %93 {offsets = [0, 1, 0], sizes = [4, 1, 16], strides = [1, 1, 1]} : vector<4x3x18xf32> to vector<4x1x16xf32>
      %104 = vector.shape_cast %103 : vector<4x1x16xf32> to vector<4x16xf32>
      %c12 = arith.constant 12 : index
      %c0_77 = arith.constant 0 : index
      %105 = vector.load %arg12[%c12, %c0_77] : memref<36x16xf32, #tpu.memory_space<vmem>>, vector<4x16xf32>
      tpu.vector_store %arg12[%c12, %c0_77], %104 {strides = array<i32>} : memref<36x16xf32, #tpu.memory_space<vmem>>, vector<4x16xf32>,
      %106 = vector.extract_strided_slice %93 {offsets = [0, 1, 1], sizes = [4, 1, 16], strides = [1, 1, 1]} : vector<4x3x18xf32> to vector<4x1x16xf32>
      %107 = vector.shape_cast %106 : vector<4x1x16xf32> to vector<4x16xf32>
      %c16 = arith.constant 16 : index
      %c0_78 = arith.constant 0 : index
      %108 = vector.load %arg12[%c16, %c0_78] : memref<36x16xf32, #tpu.memory_space<vmem>>, vector<4x16xf32>
      tpu.vector_store %arg12[%c16, %c0_78], %107 {strides = array<i32>} : memref<36x16xf32, #tpu.memory_space<vmem>>, vector<4x16xf32>,
      %109 = vector.extract_strided_slice %93 {offsets = [0, 1, 2], sizes = [4, 1, 16], strides = [1, 1, 1]} : vector<4x3x18xf32> to vector<4x1x16xf32>
      %110 = vector.shape_cast %109 : vector<4x1x16xf32> to vector<4x16xf32>
      %c20 = arith.constant 20 : index
      %c0_79 = arith.constant 0 : index
      %111 = vector.load %arg12[%c20, %c0_79] : memref<36x16xf32, #tpu.memory_space<vmem>>, vector<4x16xf32>
      tpu.vector_store %arg12[%c20, %c0_79], %110 {strides = array<i32>} : memref<36x16xf32, #tpu.memory_space<vmem>>, vector<4x16xf32>,
      %112 = vector.extract_strided_slice %93 {offsets = [0, 2, 0], sizes = [4, 1, 16], strides = [1, 1, 1]} : vector<4x3x18xf32> to vector<4x1x16xf32>
      %113 = vector.shape_cast %112 : vector<4x1x16xf32> to vector<4x16xf32>
      %c24 = arith.constant 24 : index
      %c0_80 = arith.constant 0 : index
      %114 = vector.load %arg12[%c24, %c0_80] : memref<36x16xf32, #tpu.memory_space<vmem>>, vector<4x16xf32>
      tpu.vector_store %arg12[%c24, %c0_80], %113 {strides = array<i32>} : memref<36x16xf32, #tpu.memory_space<vmem>>, vector<4x16xf32>,
      %115 = vector.extract_strided_slice %93 {offsets = [0, 2, 1], sizes = [4, 1, 16], strides = [1, 1, 1]} : vector<4x3x18xf32> to vector<4x1x16xf32>
      %116 = vector.shape_cast %115 : vector<4x1x16xf32> to vector<4x16xf32>
      %c28 = arith.constant 28 : index
      %c0_81 = arith.constant 0 : index
      %117 = vector.load %arg12[%c28, %c0_81] : memref<36x16xf32, #tpu.memory_space<vmem>>, vector<4x16xf32>
      tpu.vector_store %arg12[%c28, %c0_81], %116 {strides = array<i32>} : memref<36x16xf32, #tpu.memory_space<vmem>>, vector<4x16xf32>,
      %118 = vector.extract_strided_slice %93 {offsets = [0, 2, 2], sizes = [4, 1, 16], strides = [1, 1, 1]} : vector<4x3x18xf32> to vector<4x1x16xf32>
      %119 = vector.shape_cast %118 : vector<4x1x16xf32> to vector<4x16xf32>
      %c32 = arith.constant 32 : index
      %c0_82 = arith.constant 0 : index
      %120 = vector.load %arg12[%c32, %c0_82] : memref<36x16xf32, #tpu.memory_space<vmem>>, vector<4x16xf32>
      tpu.vector_store %arg12[%c32, %c0_82], %119 {strides = array<i32>} : memref<36x16xf32, #tpu.memory_space<vmem>>, vector<4x16xf32>,
      %c0_83 = arith.constant 0 : index
      %c0_84 = arith.constant 0 : index
      %121 = vector.load %arg12[%c0_83, %c0_84] : memref<36x16xf32, #tpu.memory_space<vmem>>, vector<36x16xf32>
      %cst_85 = arith.constant dense<0.000000e+00> : vector<4x16xf32>
      %122 = tpu.matmul %43, %121, %cst_85 {dimension_numbers = #tpu.dot_dimension_numbers<[1], [0], [0], [1], [0, 0, 1, 1], [], []>} : vector<4x36xf32>, vector<36x16xf32>, vector<4x16xf32> -> vector<4x16xf32>
      %123 = vector.broadcast %44 : vector<4x1xf32> to vector<4x16xf32>
      %124 = arith.addf %122, %123 : vector<4x16xf32>
      %125 = vector.shape_cast %124 : vector<4x16xf32> to vector<4x1x16xf32>
      %c0_86 = arith.constant 0 : index
      %126 = arith.index_cast %arg14 : i32 to index
      %c0_87 = arith.constant 0 : index
      %127 = vector.load %arg13[%c0_86, %126, %c0_87] : memref<4x16x16xf32, #tpu.memory_space<vmem>>, vector<4x1x16xf32>
      tpu.vector_store %arg13[%c0_86, %126, %c0_87], %125 {strides = array<i32>} : memref<4x16x16xf32, #tpu.memory_space<vmem>>, vector<4x1x16xf32>,
    }
    %c16_i32_33 = arith.constant 16 : i32
    %c0_34 = arith.constant 0 : index
    %c0_35 = arith.constant 0 : index
    %c0_36 = arith.constant 0 : index
    %46 = vector.load %arg13[%c0_34, %c0_35, %c0_36] : memref<4x16x16xf32, #tpu.memory_space<vmem>>, vector<4x16x16xf32>
    %c0_37 = arith.constant 0 : index
    %c0_38 = arith.constant 0 : index
    %47 = vector.load %arg6[%c0_37, %c0_38] : memref<16x1xf32, #tpu.memory_space<vmem>>, vector<16x1xf32>
    %c0_39 = arith.constant 0 : index
    %c0_40 = arith.constant 0 : index
    %48 = vector.load %arg7[%c0_39, %c0_40] : memref<16x1xf32, #tpu.memory_space<vmem>>, vector<16x1xf32>
    %cst_41 = arith.constant dense<0.000000e+00> : vector<4x16xf32>
    %49 = vector.multi_reduction <add>, %46, %cst_41 [1] : vector<4x16x16xf32> to vector<4x16xf32>
    %50 = vector.shape_cast %49 : vector<4x16xf32> to vector<4x1x16xf32>
    %cst_42 = arith.constant 1.600000e+01 : f32
    %51 = vector.broadcast %cst_42 : f32 to vector<4x1x16xf32>
    %52 = arith.divf %50, %51 : vector<4x1x16xf32>
    %53 = vector.broadcast %52 : vector<4x1x16xf32> to vector<4x16x16xf32>
    %54 = arith.subf %46, %53 : vector<4x16x16xf32>
    %55 = arith.mulf %54, %54 : vector<4x16x16xf32>
    %cst_43 = arith.constant dense<0.000000e+00> : vector<4x16xf32>
    %56 = vector.multi_reduction <add>, %55, %cst_43 [1] : vector<4x16x16xf32> to vector<4x16xf32>
    %57 = vector.shape_cast %56 : vector<4x16xf32> to vector<4x1x16xf32>
    %cst_44 = arith.constant 1.600000e+01 : f32
    %58 = vector.broadcast %cst_44 : f32 to vector<4x1x16xf32>
    %59 = arith.divf %57, %58 : vector<4x1x16xf32>
    %60 = vector.broadcast %52 : vector<4x1x16xf32> to vector<4x16x16xf32>
    %61 = arith.subf %46, %60 : vector<4x16x16xf32>
    %cst_45 = arith.constant 9.99999974E-6 : f32
    %62 = vector.broadcast %cst_45 : f32 to vector<4x1x16xf32>
    %63 = arith.addf %59, %62 : vector<4x1x16xf32>
    %64 = math.rsqrt %63 : vector<4x1x16xf32>
    %65 = vector.broadcast %64 : vector<4x1x16xf32> to vector<4x16x16xf32>
    %66 = arith.mulf %61, %65 : vector<4x16x16xf32>
    %67 = vector.shape_cast %47 : vector<16x1xf32> to vector<1x16x1xf32>
    %68 = vector.broadcast %67 : vector<1x16x1xf32> to vector<4x16x16xf32>
    %69 = arith.mulf %66, %68 : vector<4x16x16xf32>
    %70 = vector.shape_cast %48 : vector<16x1xf32> to vector<1x16x1xf32>
    %71 = vector.broadcast %70 : vector<1x16x1xf32> to vector<4x16x16xf32>
    %72 = arith.addf %69, %71 : vector<4x16x16xf32>
    %cst_46 = arith.constant 5.000000e-01 : f32
    %73 = vector.broadcast %cst_46 : f32 to vector<4x16x16xf32>
    %74 = arith.mulf %73, %72 : vector<4x16x16xf32>
    %cst_47 = arith.constant 0.707106769 : f32
    %75 = vector.broadcast %cst_47 : f32 to vector<4x16x16xf32>
    %76 = arith.mulf %72, %75 : vector<4x16x16xf32>
    %77 = math.erf %76 : vector<4x16x16xf32>
    %cst_48 = arith.constant 1.000000e+00 : f32
    %78 = vector.broadcast %cst_48 : f32 to vector<4x16x16xf32>
    %79 = arith.addf %78, %77 : vector<4x16x16xf32>
    %80 = arith.mulf %74, %79 : vector<4x16x16xf32>
    %c0_49 = arith.constant 0 : index
    %c1_50 = arith.constant 1 : index
    %c1_51 = arith.constant 1 : index
    %81 = vector.load %arg11[%c0_49, %c1_50, %c1_51] : memref<4x18x18xf32, #tpu.memory_space<vmem>>, vector<4x16x16xf32>
    tpu.vector_store %arg11[%c0_49, %c1_50, %c1_51], %80 {strides = array<i32>} : memref<4x18x18xf32, #tpu.memory_space<vmem>>, vector<4x16x16xf32>,
    %c0_52 = arith.constant 0 : index
    %c0_53 = arith.constant 0 : index
    %82 = vector.load %arg8[%c0_52, %c0_53] : memref<4x36xf32, #tpu.memory_space<vmem>>, vector<4x36xf32>
    %c0_54 = arith.constant 0 : index
    %c0_55 = arith.constant 0 : index
    %83 = vector.load %arg9[%c0_54, %c0_55] : memref<4x1xf32, #tpu.memory_space<vmem>>, vector<4x1xf32>
    %c0_i32_56 = arith.constant 0 : i32
    %c16_i32_57 = arith.constant 16 : i32
    %84 = arith.addi %c0_i32_56, %c16_i32_57 : i32
    %c1_i32_58 = arith.constant 1 : i32
    scf.for %arg14 = %c0_i32_56 to %84 step %c1_i32_58  : i32 {
      %c0_71 = arith.constant 0 : index
      %92 = arith.index_cast %arg14 : i32 to index
      %c0_72 = arith.constant 0 : index
      %93 = vector.load %arg11[%c0_71, %92, %c0_72] : memref<4x18x18xf32, #tpu.memory_space<vmem>>, vector<4x3x18xf32>
      %94 = vector.extract_strided_slice %93 {offsets = [0, 0, 0], sizes = [4, 1, 16], strides = [1, 1, 1]} : vector<4x3x18xf32> to vector<4x1x16xf32>
      %95 = vector.shape_cast %94 : vector<4x1x16xf32> to vector<4x16xf32>
      %c0_73 = arith.constant 0 : index
      %c0_74 = arith.constant 0 : index
      %96 = vector.load %arg12[%c0_73, %c0_74] : memref<36x16xf32, #tpu.memory_space<vmem>>, vector<4x16xf32>
      tpu.vector_store %arg12[%c0_73, %c0_74], %95 {strides = array<i32>} : memref<36x16xf32, #tpu.memory_space<vmem>>, vector<4x16xf32>,
      %97 = vector.extract_strided_slice %93 {offsets = [0, 0, 1], sizes = [4, 1, 16], strides = [1, 1, 1]} : vector<4x3x18xf32> to vector<4x1x16xf32>
      %98 = vector.shape_cast %97 : vector<4x1x16xf32> to vector<4x16xf32>
      %c4 = arith.constant 4 : index
      %c0_75 = arith.constant 0 : index
      %99 = vector.load %arg12[%c4, %c0_75] : memref<36x16xf32, #tpu.memory_space<vmem>>, vector<4x16xf32>
      tpu.vector_store %arg12[%c4, %c0_75], %98 {strides = array<i32>} : memref<36x16xf32, #tpu.memory_space<vmem>>, vector<4x16xf32>,
      %100 = vector.extract_strided_slice %93 {offsets = [0, 0, 2], sizes = [4, 1, 16], strides = [1, 1, 1]} : vector<4x3x18xf32> to vector<4x1x16xf32>
      %101 = vector.shape_cast %100 : vector<4x1x16xf32> to vector<4x16xf32>
      %c8 = arith.constant 8 : index
      %c0_76 = arith.constant 0 : index
      %102 = vector.load %arg12[%c8, %c0_76] : memref<36x16xf32, #tpu.memory_space<vmem>>, vector<4x16xf32>
      tpu.vector_store %arg12[%c8, %c0_76], %101 {strides = array<i32>} : memref<36x16xf32, #tpu.memory_space<vmem>>, vector<4x16xf32>,
      %103 = vector.extract_strided_slice %93 {offsets = [0, 1, 0], sizes = [4, 1, 16], strides = [1, 1, 1]} : vector<4x3x18xf32> to vector<4x1x16xf32>
      %104 = vector.shape_cast %103 : vector<4x1x16xf32> to vector<4x16xf32>
      %c12 = arith.constant 12 : index
      %c0_77 = arith.constant 0 : index
      %105 = vector.load %arg12[%c12, %c0_77] : memref<36x16xf32, #tpu.memory_space<vmem>>, vector<4x16xf32>
      tpu.vector_store %arg12[%c12, %c0_77], %104 {strides = array<i32>} : memref<36x16xf32, #tpu.memory_space<vmem>>, vector<4x16xf32>,
      %106 = vector.extract_strided_slice %93 {offsets = [0, 1, 1], sizes = [4, 1, 16], strides = [1, 1, 1]} : vector<4x3x18xf32> to vector<4x1x16xf32>
      %107 = vector.shape_cast %106 : vector<4x1x16xf32> to vector<4x16xf32>
      %c16 = arith.constant 16 : index
      %c0_78 = arith.constant 0 : index
      %108 = vector.load %arg12[%c16, %c0_78] : memref<36x16xf32, #tpu.memory_space<vmem>>, vector<4x16xf32>
      tpu.vector_store %arg12[%c16, %c0_78], %107 {strides = array<i32>} : memref<36x16xf32, #tpu.memory_space<vmem>>, vector<4x16xf32>,
      %109 = vector.extract_strided_slice %93 {offsets = [0, 1, 2], sizes = [4, 1, 16], strides = [1, 1, 1]} : vector<4x3x18xf32> to vector<4x1x16xf32>
      %110 = vector.shape_cast %109 : vector<4x1x16xf32> to vector<4x16xf32>
      %c20 = arith.constant 20 : index
      %c0_79 = arith.constant 0 : index
      %111 = vector.load %arg12[%c20, %c0_79] : memref<36x16xf32, #tpu.memory_space<vmem>>, vector<4x16xf32>
      tpu.vector_store %arg12[%c20, %c0_79], %110 {strides = array<i32>} : memref<36x16xf32, #tpu.memory_space<vmem>>, vector<4x16xf32>,
      %112 = vector.extract_strided_slice %93 {offsets = [0, 2, 0], sizes = [4, 1, 16], strides = [1, 1, 1]} : vector<4x3x18xf32> to vector<4x1x16xf32>
      %113 = vector.shape_cast %112 : vector<4x1x16xf32> to vector<4x16xf32>
      %c24 = arith.constant 24 : index
      %c0_80 = arith.constant 0 : index
      %114 = vector.load %arg12[%c24, %c0_80] : memref<36x16xf32, #tpu.memory_space<vmem>>, vector<4x16xf32>
      tpu.vector_store %arg12[%c24, %c0_80], %113 {strides = array<i32>} : memref<36x16xf32, #tpu.memory_space<vmem>>, vector<4x16xf32>,
      %115 = vector.extract_strided_slice %93 {offsets = [0, 2, 1], sizes = [4, 1, 16], strides = [1, 1, 1]} : vector<4x3x18xf32> to vector<4x1x16xf32>
      %116 = vector.shape_cast %115 : vector<4x1x16xf32> to vector<4x16xf32>
      %c28 = arith.constant 28 : index
      %c0_81 = arith.constant 0 : index
      %117 = vector.load %arg12[%c28, %c0_81] : memref<36x16xf32, #tpu.memory_space<vmem>>, vector<4x16xf32>
      tpu.vector_store %arg12[%c28, %c0_81], %116 {strides = array<i32>} : memref<36x16xf32, #tpu.memory_space<vmem>>, vector<4x16xf32>,
      %118 = vector.extract_strided_slice %93 {offsets = [0, 2, 2], sizes = [4, 1, 16], strides = [1, 1, 1]} : vector<4x3x18xf32> to vector<4x1x16xf32>
      %119 = vector.shape_cast %118 : vector<4x1x16xf32> to vector<4x16xf32>
      %c32 = arith.constant 32 : index
      %c0_82 = arith.constant 0 : index
      %120 = vector.load %arg12[%c32, %c0_82] : memref<36x16xf32, #tpu.memory_space<vmem>>, vector<4x16xf32>
      tpu.vector_store %arg12[%c32, %c0_82], %119 {strides = array<i32>} : memref<36x16xf32, #tpu.memory_space<vmem>>, vector<4x16xf32>,
      %c0_83 = arith.constant 0 : index
      %c0_84 = arith.constant 0 : index
      %121 = vector.load %arg12[%c0_83, %c0_84] : memref<36x16xf32, #tpu.memory_space<vmem>>, vector<36x16xf32>
      %cst_85 = arith.constant dense<0.000000e+00> : vector<4x16xf32>
      %122 = tpu.matmul %82, %121, %cst_85 {dimension_numbers = #tpu.dot_dimension_numbers<[1], [0], [0], [1], [0, 0, 1, 1], [], []>} : vector<4x36xf32>, vector<36x16xf32>, vector<4x16xf32> -> vector<4x16xf32>
      %123 = vector.broadcast %83 : vector<4x1xf32> to vector<4x16xf32>
      %124 = arith.addf %122, %123 : vector<4x16xf32>
      %125 = vector.shape_cast %124 : vector<4x16xf32> to vector<4x1x16xf32>
      %c0_86 = arith.constant 0 : index
      %126 = arith.index_cast %arg14 : i32 to index
      %c0_87 = arith.constant 0 : index
      %127 = vector.load %arg13[%c0_86, %126, %c0_87] : memref<4x16x16xf32, #tpu.memory_space<vmem>>, vector<4x1x16xf32>
      tpu.vector_store %arg13[%c0_86, %126, %c0_87], %125 {strides = array<i32>} : memref<4x16x16xf32, #tpu.memory_space<vmem>>, vector<4x1x16xf32>,
    }
    %c16_i32_59 = arith.constant 16 : i32
    %c0_60 = arith.constant 0 : index
    %c0_61 = arith.constant 0 : index
    %c0_62 = arith.constant 0 : index
    %85 = vector.load %arg13[%c0_60, %c0_61, %c0_62] : memref<4x16x16xf32, #tpu.memory_space<vmem>>, vector<4x16x16xf32>
    %c0_63 = arith.constant 0 : index
    %c0_64 = arith.constant 0 : index
    %c0_65 = arith.constant 0 : index
    %c0_66 = arith.constant 0 : index
    %86 = vector.load %arg1[%c0_63, %c0_64, %c0_65, %c0_66] : memref<1x4x16x16xf32, #tpu.memory_space<vmem>>, vector<1x4x16x16xf32>
    %87 = vector.shape_cast %86 : vector<1x4x16x16xf32> to vector<4x16x16xf32>
    %88 = arith.addf %85, %87 : vector<4x16x16xf32>
    %c0_67 = arith.constant 0 : index
    %c0_68 = arith.constant 0 : index
    %c0_69 = arith.constant 0 : index
    %c0_70 = arith.constant 0 : index
    %89 = vector.load %arg10[%c0_67, %c0_68, %c0_69, %c0_70] : memref<1x4x16x16xf32, #tpu.memory_space<vmem>>, vector<1x4x16x16xf32>
    %90 = vector.shape_cast %89 : vector<1x4x16x16xf32> to vector<4x16x16xf32>
    %91 = vector.shape_cast %88 : vector<4x16x16xf32> to vector<1x4x16x16xf32>
    tpu.vector_store %arg10[%c0_67, %c0_68, %c0_69, %c0_70], %91 {strides = array<i32>} : memref<1x4x16x16xf32, #tpu.memory_space<vmem>>, vector<1x4x16x16xf32>,
    return
  }
  func.func @transform_0(%arg0: i32) -> (i32, i32, i32, i32) {
    %c0_i32 = arith.constant 0 : i32
    %c0_i32_0 = arith.constant 0 : i32
    %c0_i32_1 = arith.constant 0 : i32
    %c0_i32_2 = arith.constant 0 : i32
    return %arg0, %c0_i32, %c0_i32_0, %c0_i32_1 : i32, i32, i32, i32
  }
  func.func @transform_1(%arg0: i32) -> (i32, i32) {
    %c0_i32 = arith.constant 0 : i32
    %c0_i32_0 = arith.constant 0 : i32
    %c0_i32_1 = arith.constant 0 : i32
    return %c0_i32, %c0_i32_0 : i32, i32
  }
  func.func @transform_2(%arg0: i32) -> (i32, i32) {
    %c0_i32 = arith.constant 0 : i32
    %c0_i32_0 = arith.constant 0 : i32
    %c0_i32_1 = arith.constant 0 : i32
    return %c0_i32, %c0_i32_0 : i32, i32
  }
  func.func @transform_3(%arg0: i32) -> (i32, i32) {
    %c0_i32 = arith.constant 0 : i32
    %c0_i32_0 = arith.constant 0 : i32
    %c0_i32_1 = arith.constant 0 : i32
    return %c0_i32, %c0_i32_0 : i32, i32
  }
  func.func @transform_4(%arg0: i32) -> (i32, i32) {
    %c0_i32 = arith.constant 0 : i32
    %c0_i32_0 = arith.constant 0 : i32
    %c0_i32_1 = arith.constant 0 : i32
    return %c0_i32, %c0_i32_0 : i32, i32
  }
  func.func @transform_5(%arg0: i32) -> (i32, i32) {
    %c0_i32 = arith.constant 0 : i32
    %c0_i32_0 = arith.constant 0 : i32
    %c0_i32_1 = arith.constant 0 : i32
    return %c0_i32, %c0_i32_0 : i32, i32
  }
  func.func @transform_6(%arg0: i32) -> (i32, i32) {
    %c0_i32 = arith.constant 0 : i32
    %c0_i32_0 = arith.constant 0 : i32
    %c0_i32_1 = arith.constant 0 : i32
    return %c0_i32, %c0_i32_0 : i32, i32
  }
  func.func @transform_7(%arg0: i32) -> (i32, i32) {
    %c0_i32 = arith.constant 0 : i32
    %c0_i32_0 = arith.constant 0 : i32
    %c0_i32_1 = arith.constant 0 : i32
    return %c0_i32, %c0_i32_0 : i32, i32
  }
  func.func @transform_8(%arg0: i32) -> (i32, i32) {
    %c0_i32 = arith.constant 0 : i32
    %c0_i32_0 = arith.constant 0 : i32
    %c0_i32_1 = arith.constant 0 : i32
    return %c0_i32, %c0_i32_0 : i32, i32
  }
  func.func @transform_9(%arg0: i32) -> (i32, i32, i32, i32) {
    %c0_i32 = arith.constant 0 : i32
    %c0_i32_0 = arith.constant 0 : i32
    %c0_i32_1 = arith.constant 0 : i32
    %c0_i32_2 = arith.constant 0 : i32
    return %arg0, %c0_i32, %c0_i32_0, %c0_i32_1 : i32, i32, i32, i32
  }
}

</mosaic_0001>

<bundles_post_ra>
// kernel: tpu_custom_call.1
= control target key start
LH: loop header
LB: loop body
LE: loop exit
PB: predicated region body
PF: predicated region fallthrough
CT: control target
= control target key end

     0   :  { %14 = vsyncpa [#allocation6], 0  ;;  %s2313_s0 = inlined_call_operand.hbm [shape: f32[2,4,16,16], index: 0, kind: input, shape index: {}]   ;;  %s2314_s1 = inlined_call_operand.vmem [shape: f32[16,1], index: 1, kind: input, shape index: {}]   ;;  %s2315_s2 = inlined_call_operand.vmem [shape: f32[16,1], index: 2, kind: input, shape index: {}]   ;;  %s2316_s3 = inlined_call_operand.vmem [shape: f32[4,36], index: 3, kind: input, shape index: {}]   ;;  %s2317_s4 = inlined_call_operand.vmem [shape: f32[4,1], index: 4, kind: input, shape index: {}]   ;;  %s2318_s5 = inlined_call_operand.vmem [shape: f32[16,1], index: 5, kind: input, shape index: {}]   ;;  %s2319_s6 = inlined_call_operand.vmem [shape: f32[16,1], index: 6, kind: input, shape index: {}]   ;;  %s2320_s7 = inlined_call_operand.vmem [shape: f32[4,36], index: 7, kind: input, shape index: {}]   ;;  %s2321_s8 = inlined_call_operand.vmem [shape: f32[4,1], index: 8, kind: input, shape index: {}]   ;;  %s2322_s9 = inlined_call_operand.hbm [shape: f32[2,4,16,16], index: 9, kind: output, shape index: {}]  }
   0x1   :  { %16 = vsyncpa [#allocation6 + $0x1], 0 }
   0x2   :  { %17 = vsyncpa [#allocation7], 0 }
   0x3   :  { %19 = vsyncpa [#allocation7 + $0x1], 0  ;;  %s1756_s30 = smov 0   ;;  %s1758_s10 = smov 0  }
   0x4   :  { %s1760_s11 = smov 0   ;;  %s1762_s12 = smov 0  }
   0x5 LB: > { %2326 = sst [smem:[#allocation11_spill]] %s1672_s11  ;;  %s1777_s13 = sadd.s32 4294967295, %s1676_s12   ;;  %s1676_s12 = sphi %s1762_s12, %s2341_s12   ;;  %s1672_s11 = sphi %s1760_s11, %s2338_s11   ;;  %s1668_s10 = sphi %s1758_s10, %s2340_s10   ;;  %s1664_s30 = sphi %s1756_s30, %s2339_s30  }
   0x6   : > { %s1384_s14 = sadd.s32 4294967294, %s1676_s12   ;;  %s1781_s15 = sadd.s32 1, %s1676_s12  }
   0x7   : > { %s32_s16 = sadd.s32 1, %s1672_s11  ;;  %s29_s17 = ssub.s32 %s1676_s12, %s1781_s15 }
   0x8   : > { %p39_p0 = scmp.ne.s32.totalorder %s1672_s11, %s1668_s10  ;;  %p30_p1 = scmp.eq.s32.totalorder %s29_s17, 0 }
   0x9   : > { %p40_p2 = scmp.eq.s32.totalorder %s1676_s12, 0  ;;  %p45_p3 = scmp.ne.s32.totalorder %s1668_s10, %s1664_s30 }
   0xa   : > { %p46_p4 = scmp.eq.s32.totalorder %s1777_s13, 0  ;;  %p237_p7 = scmp.eq.s32.totalorder %s1777_s13, 1 }
   0xb   : > { %s1793_s18 = scalar_select %p30_p1, %s1672_s11, %s32_s16  }
   0xc   : > { %p1795_p5 = por %p40_p2, %p39_p0  ;;  %p1799_p6 = por %p46_p4, %p45_p3 }
   0xd   : > { %2327 = sst [smem:[#allocation12_spill]] %s1793_s18  ;;  %p243_p8 = scmp.eq.s32.totalorder %s1384_s14, 1 }
   0xe   : > { %s2329_s20 = scalar_select %p1799_p6, 1, 0 }
   0xf   : > { %p1454_p10 = scmp.lt.s32.totalorder %s1676_s12, 2  ;;  %p1806_p11 = por %p237_p7, %p39_p0 }
  0x10   : > { %p1810_p12 = por %p243_p8, %p45_p3  ;;  %s287_s23 = sand.u32 1, %s1672_s11  }
  0x11   : > { %s2330_s21 = scalar_select %p1806_p11, 1, 0 }
  0x12   : > { %s2331_s22 = scalar_select %p1810_p12, 1, 0 }
  0x13   : > { %s1402_s24 = sshll.u32 %s1676_s12, 10  ;;  %s1387_s25 = sshll.u32 %s287_s23, 6 }
  0x14   : > { %s1819_s28 = scalar_lea.hbm %s2313_s0, %s1402_s24  ;;  %s291_s29 = scalar_lea.vmem [#allocation5], %s1387_s25 }
  0x15   : > { %s298_s14 = sshll.u32 %s291_s29, 4  ;;  %p1823_p13 = pnand %p1454_p10, %p1795_p5  ;;  %s1827_s14 = int_to_ptr.vmem [resolvable:$true] %s298_s14 }
  0x16   : > { %s1829_s17 = scalar_lea.sflag [#allocation6], %s287_s23  ;;  %s1576_s18 = scalar_lea.hbm %s1819_s28, 1024 }
  0x17   : > { %p1577_p0 = scmp.ne.s32.totalorder %s1819_s28, %s1576_s18  ;;  %p1578_p1 = pneg %p1823_p13 }
  0x18   : > { %s1581_s25 = scalar_lea.hbm %s2313_s0, 2048  ;;  %p1582_p4 = scmp.lt.s32.totalorder %s1819_s28, %s2313_s0 }
  0x19   : > { %p1579_p2 = pnand %p1578_p1, %p1577_p0  ;;  %p1583_p5 = scmp.lt.s32.totalorder %s1581_s25, %s1576_s18 }
  0x1b   : > { %p1580_p3 = pneg %p1579_p2  ;;  %p1584_p7 = por %p1583_p5, %p1582_p4 }
  0x1d   : > { %p1585_p8 = pnand %p1584_p7, %p1580_p3 }
  0x1f   : > { %1588 = shalt.err (!%p1585_p8)
}
  0x20   : > { %s1589_s23 = scalar_lea.vmem %s1827_s14, 1024  ;;  %s1686_s29 = smov [#allocation5]  }
  0x21   : > { %p1590_p10 = scmp.ne.s32.totalorder %s1827_s14, %s1589_s23  ;;  %s1594_s11 = sshll.u32 %s1686_s29, 4  ;;  %s1595_s11 = int_to_ptr.vmem [resolvable:$false] %s1594_s11 }
  0x22   : > { %s1596_s24 = scalar_lea.vmem %s1595_s11, 2048  ;;  %p1597_p2 = scmp.lt.s32.totalorder %s1827_s14, %s1595_s11 }
  0x23   : > { %p1592_p9 = pnand %p1590_p10, %p1578_p1  ;;  %p1598_p12 = scmp.lt.s32.totalorder %s1596_s24, %s1589_s23 }
  0x25   : > { %p1593_p0 = pneg %p1592_p9  ;;  %p1599_p11 = por %p1598_p12, %p1597_p2 }
  0x27   : > { %p1600_p6 = pnand %p1599_p11, %p1593_p0 }
  0x29   : > { %1603 = shalt.err (!%p1600_p6)
}
  0x2a   : > { %s1687_s18 = smov 128   ;;  %s1688_s26 = smov 8  }
  0x2b   : > { %1449 = dma.hbm_to_vmem [thread:$0]  (!%p1823_p13), %s1819_s28, 1024, %s1827_s14, %s1829_s17, %s1687_s18, %s1687_s18, %s1688_s26  }
  0x2c   : > { %p1390_p9 = scmp.ge.s32.totalorder %s1676_s12, 1  ;;  %p306_p1 = scmp.lt.s32.totalorder %s1676_s12, 3 }
  0x2e   : > { %p307_p3 = pnand %p1390_p9, %p306_p1 }
  0x2f   : > { %s1853_s11 = sand.u32 (!%p307_p3), 1, %s1668_s10   ;;  %p2333_p6 = scmp.ne.s32.totalorder (!%p307_p3), %s2329_s20, 0 }
  0x30   : > { %310 = sbr.rel (%p307_p3) target bundleno = 1283 (0x503), region = 56  ;;  %s1391_s25 = sshll.u32 (!%p307_p3), %s1853_s11, 6 }
  0x31   : > { %s313_s19 = scalar_lea.sflag (!%p307_p3), [#allocation6], %s1853_s11  ;;  %s1859_s27 = scalar_lea.vmem (!%p307_p3), [#allocation5], %s1391_s25 }
  0x35   : > { %1655 = dma.done.wait (%p2333_p6), %s313_s19, 1024  }
  0x36   : > { %1657 = vsyncadd (%p2333_p6), %s313_s19, 4294966272  ;;  %v1689_v0 = vmov 0   ;;  %v1870_v1 = vld [vmem:[%s2316_s3] sm:$0xf]  ;;  %v399_v5 = vld [vmem:[%s2315_s2 + $0x8] sm:$0xff]  ;;  %vm400_vm0 = vcmask 130048  }
  0x37   : > { %1523 = vset.pattern.permute.xlu1 %v1689_v0  ;;  %1522 = vset.pattern.permute.xlu0 %v1689_v0  ;;  %v1875_v2 = vld [vmem:[%s2317_s4] sm:$0xf]  ;;  %v397_v6 = vld [vmem:[%s2314_s1 + $0x8] sm:$0xff]  ;;  %v1893_v8 = vld [vmem:[%s1859_s27 + $0x8] sm:$0xff]  ;;  %vm351_vm1 = vcmask 139264   ;;  %vm360_vm2 = vcmask 7168  }
  0x38   : > { %v398_v3 = vld [vmem:[%s2315_s2] sm:$0xff]  ;;  %v1890_v7 = vld [vmem:[%s1859_s27] sm:$0xff]  ;;  %v1896_v9 = vld [vmem:[%s1859_s27 + $0x10] sm:$0xff]  ;;  %v402_v16 = vsel %vm400_vm0, %v1893_v8, 0.0  ;;  %vm374_vm3 = vcmask 146568   ;;  %v1690_v38 = vmov 0.0  }
  0x39   : > { %534 = vperm.xlu1 %1523, %v398_v3   ;;  %v396_v4 = vld [vmem:[%s2314_s1] sm:$0xff]  ;;  %v1902_v11 = vld [vmem:[%s1859_s27 + $0x20] sm:$0xff]  ;;  %v1905_v12 = vld [vmem:[%s1859_s27 + $0x28] sm:$0xff]  ;;  %v401_v15 = vsel %vm400_vm0, %v1890_v7, 0.0  ;;  %v410_v17 = vsel %vm400_vm0, %v1896_v9, 0.0  ;;  %362 = vst.msk [vmem:[#allocation2 + $0x8] sm:$0xff] %vm360_vm2, %v1690_v38 }
  0x3a   : > { %516 = vperm.xlu0 %1522, %v396_v4   ;;  %v1899_v10 = vld [vmem:[%s1859_s27 + $0x18] sm:$0xff]  ;;  %v1908_v13 = vld [vmem:[%s1859_s27 + $0x30] sm:$0xff]  ;;  %v419_v19 = vsel %vm400_vm0, %v1902_v11, 0.0  ;;  %v420_v20 = vsel %vm400_vm0, %v1905_v12, 0.0  ;;  %v403_v21 = vadd.f32 %v402_v16, %v401_v15  ;;  %352 = vst.msk [vmem:[#allocation2] sm:$0x1] %vm351_vm1, %v1690_v38 }
  0x3b   : > { %v1911_v14 = vld [vmem:[%s1859_s27 + $0x38] sm:$0xff]  ;;  %v411_v18 = vsel %vm400_vm0, %v1899_v10, 0.0  ;;  %v428_v22 = vsel %vm400_vm0, %v1908_v13, 0.0  ;;  %v421_v25 = vadd.f32 %v420_v20, %v419_v19  ;;  %353 = vst.msk [vmem:[#allocation2 + $0x18] sm:$0x1] %vm351_vm1, %v1690_v38  ;;  %vm363_vm4 = vcmask 1024  }
  0x3c   : > { %v429_v23 = vsel %vm400_vm0, %v1911_v14, 0.0  ;;  %v412_v24 = vadd.f32 %v411_v18, %v410_v17  ;;  %v404_v27 = vrot.slane %v403_v21, 4  ;;  %354 = vst.msk [vmem:[#allocation2 + $0x30] sm:$0x1] %vm351_vm1, %v1690_v38  ;;  %355 = vst.msk [vmem:[#allocation2 + $0x48] sm:$0x1] %vm351_vm1, %v1690_v38 }
  0x3d   : > { %539 = vperm.xlu1 %1523, %v399_v5   ;;  %v430_v26 = vadd.f32 %v429_v23, %v428_v22  ;;  %v422_v29 = vrot.slane %v421_v25, 4  ;;  %356 = vst.msk [vmem:[#allocation2 + $0x11] sm:$0x1] %vm351_vm1, %v1690_v38  ;;  %357 = vst.msk [vmem:[#allocation2 + $0x29] sm:$0x1] %vm351_vm1, %v1690_v38  ;;  %vm377_vm5 = vcmask 140424  }
  0x3e   : > { %521 = vperm.xlu0 %1522, %v397_v6   ;;  %v413_v28 = vrot.slane %v412_v24, 4  ;;  %v405_v31 = vadd.f32 %v404_v27, %v403_v21  ;;  %358 = vst.msk [vmem:[#allocation2 + $0x41] sm:$0x1] %vm351_vm1, %v1690_v38  ;;  %359 = vst.msk [vmem:[#allocation2 + $0x59] sm:$0x1] %vm351_vm1, %v1690_v38  ;;  %s1691_s14 = smov 1  }
  0x3f   : > { %v431_v30 = vrot.slane %v430_v26, 4  ;;  %v423_v33 = vadd.f32 %v422_v29, %v421_v25  ;;  %366 = vst.msk [vmem:[#allocation2 + $0x20] sm:$0xff] %vm360_vm2, %v1690_v38  ;;  %369 = vst.msk [vmem:[#allocation2 + $0x38] sm:$0xff] %vm360_vm2, %v1690_v38  ;;  %vm622_vm6 = vcmask 138248   ;;  %s2055_s16 = scalar_lea.vmem [#allocation8], %s1391_s25  ;;  %s2057_s17 = smov 0  }
  0x40   : > { %v414_v32 = vadd.f32 %v413_v28, %v412_v24  ;;  %v406_v35 = vrot.slane %v405_v31, 2  ;;  %372 = vst.msk [vmem:[#allocation2 + $0x50] sm:$0xff] %vm360_vm2, %v1690_v38  ;;  %361 = vst.msk [vmem:[#allocation2] sm:$0xff] %vm360_vm2, %v1690_v38 }
  0x41   : > { %v432_v34 = vadd.f32 %v431_v30, %v430_v26  ;;  %v424_v37 = vrot.slane %v423_v33, 2  ;;  %376 = vst.msk [vmem:[#allocation2 + $0x8] sm:$0xff] %vm374_vm3, %v1690_v38  ;;  %380 = vst.msk [vmem:[#allocation2 + $0x20] sm:$0xff] %vm374_vm3, %v1690_v38 }
  0x42   : > { %v415_v36 = vrot.slane %v414_v32, 2  ;;  %365 = vst.msk [vmem:[#allocation2 + $0x18] sm:$0xff] %vm360_vm2, %v1690_v38  ;;  %368 = vst.msk [vmem:[#allocation2 + $0x30] sm:$0xff] %vm360_vm2, %v1690_v38  ;;  %v407_v40 = vadd.f32 %v406_v35, %v405_v31 }
  0x43   : > { %v433_v39 = vrot.slane %v432_v34, 2  ;;  %371 = vst.msk [vmem:[#allocation2 + $0x48] sm:$0xff] %vm360_vm2, %v1690_v38  ;;  %v425_v42 = vadd.f32 %v424_v37, %v423_v33 }
  0x44   : > { %383 = vst.msk [vmem:[#allocation2 + $0x38] sm:$0xff] %vm374_vm3, %v1690_v38  ;;  %386 = vst.msk [vmem:[#allocation2 + $0x50] sm:$0xff] %vm374_vm3, %v1690_v38  ;;  %v416_v41 = vadd.f32 %v415_v36, %v414_v32  ;;  %v408_v44 = vrot.slane %v407_v40, 1 }
  0x45   : > { %375 = vst.msk [vmem:[#allocation2] sm:$0xff] %vm374_vm3, %v1690_v38  ;;  %379 = vst.msk [vmem:[#allocation2 + $0x18] sm:$0xff] %vm374_vm3, %v1690_v38  ;;  %v434_v43 = vadd.f32 %v433_v39, %v432_v34  ;;  %v426_v46 = vrot.slane %v425_v42, 1 }
  0x46   : > { %382 = vst.msk [vmem:[#allocation2 + $0x30] sm:$0xff] %vm374_vm3, %v1690_v38  ;;  %385 = vst.msk [vmem:[#allocation2 + $0x48] sm:$0xff] %vm374_vm3, %v1690_v38  ;;  %v417_v45 = vrot.slane %v416_v41, 1  ;;  %v409_v48 = vadd.f32 %v408_v44, %v407_v40 }
  0x47   : > { %v435_v47 = vrot.slane %v434_v43, 1  ;;  %v427_v50 = vadd.f32 %v426_v46, %v425_v42  ;;  %364 = vst.msk [vmem:[#allocation2 + $0x10] sm:$0x3] %vm363_vm4, %v1690_v38  ;;  %367 = vst.msk [vmem:[#allocation2 + $0x28] sm:$0x3] %vm363_vm4, %v1690_v38 }
  0x48   : > { %v418_v49 = vadd.f32 %v417_v45, %v416_v41  ;;  %v438_v52 = vmul.f32 0.0625, %v409_v48  ;;  %370 = vst.msk [vmem:[#allocation2 + $0x40] sm:$0x3] %vm363_vm4, %v1690_v38  ;;  %373 = vst.msk [vmem:[#allocation2 + $0x58] sm:$0x3] %vm363_vm4, %v1690_v38 }
  0x49   : > { %v436_v51 = vadd.f32 %v435_v47, %v434_v43  ;;  %v440_v54 = vmul.f32 0.0625, %v427_v50  ;;  %378 = vst.msk [vmem:[#allocation2 + $0x10] sm:$0x3] %vm377_vm5, %v1690_v38  ;;  %381 = vst.msk [vmem:[#allocation2 + $0x28] sm:$0x3] %vm377_vm5, %v1690_v38 }
  0x4a   : > { %v439_v53 = vmul.f32 0.0625, %v418_v49  ;;  %v1970_v56 = vsub.f32 %v1890_v7, %v438_v52  ;;  %v1973_v57 = vsub.f32 %v1893_v8, %v438_v52  ;;  %384 = vst.msk [vmem:[#allocation2 + $0x40] sm:$0x3] %vm377_vm5, %v1690_v38  ;;  %387 = vst.msk [vmem:[#allocation2 + $0x58] sm:$0x3] %vm377_vm5, %v1690_v38 }
  0x4b   : > { %v441_v55 = vmul.f32 0.0625, %v436_v51  ;;  %v1982_v60 = vsub.f32 %v1902_v11, %v440_v54  ;;  %v1985_v61 = vsub.f32 %v1905_v12, %v440_v54 }
  0x4c   : > { %v1976_v58 = vsub.f32 %v1896_v9, %v439_v53  ;;  %v1979_v59 = vsub.f32 %v1899_v10, %v439_v53  ;;  %v450_v3 = vmul.f32 %v1970_v56, %v1970_v56  ;;  %v451_v4 = vmul.f32 %v1973_v57, %v1973_v57 }
  0x4d   : > { %v1988_v62 = vsub.f32 %v1908_v13, %v441_v55  ;;  %v1991_v63 = vsub.f32 %v1911_v14, %v441_v55  ;;  %v454_v7 = vmul.f32 %v1982_v60, %v1982_v60  ;;  %v455_v8 = vmul.f32 %v1985_v61, %v1985_v61 }
  0x4e   : > { %v452_v5 = vmul.f32 %v1976_v58, %v1976_v58  ;;  %v453_v6 = vmul.f32 %v1979_v59, %v1979_v59  ;;  %v458_v11 = vsel %vm400_vm0, %v450_v3, 0.0  ;;  %v459_v12 = vsel %vm400_vm0, %v451_v4, 0.0 }
  0x4f   : > { %v456_v9 = vmul.f32 %v1988_v62, %v1988_v62  ;;  %v457_v10 = vmul.f32 %v1991_v63, %v1991_v63  ;;  %v476_v15 = vsel %vm400_vm0, %v454_v7, 0.0  ;;  %v477_v16 = vsel %vm400_vm0, %v455_v8, 0.0 }
  0x50   : > { %v467_v13 = vsel %vm400_vm0, %v452_v5, 0.0  ;;  %v468_v14 = vsel %vm400_vm0, %v453_v6, 0.0  ;;  %v460_v17 = vadd.f32 %v459_v12, %v458_v11  ;;  %v478_v21 = vadd.f32 %v477_v16, %v476_v15 }
  0x51   : > { %v485_v18 = vsel %vm400_vm0, %v456_v9, 0.0  ;;  %v486_v19 = vsel %vm400_vm0, %v457_v10, 0.0  ;;  %v469_v20 = vadd.f32 %v468_v14, %v467_v13 }
  0x52   : > { %v487_v22 = vadd.f32 %v486_v19, %v485_v18  ;;  %v461_v23 = vrot.slane %v460_v17, 4  ;;  %v479_v25 = vrot.slane %v478_v21, 4 }
  0x53   : > { %v470_v24 = vrot.slane %v469_v20, 4 }
  0x54   : > { %v488_v26 = vrot.slane %v487_v22, 4  ;;  %v462_v27 = vadd.f32 %v461_v23, %v460_v17  ;;  %v480_v29 = vadd.f32 %v479_v25, %v478_v21 }
  0x55   : > { %v471_v28 = vadd.f32 %v470_v24, %v469_v20 }
  0x56   : > { %v489_v30 = vadd.f32 %v488_v26, %v487_v22  ;;  %v463_v31 = vrot.slane %v462_v27, 2  ;;  %v481_v33 = vrot.slane %v480_v29, 2 }
  0x57   : > { %v472_v32 = vrot.slane %v471_v28, 2 }
  0x58   : > { %v490_v34 = vrot.slane %v489_v30, 2  ;;  %v464_v35 = vadd.f32 %v463_v31, %v462_v27  ;;  %v482_v37 = vadd.f32 %v481_v33, %v480_v29 }
  0x59   : > { %v473_v36 = vadd.f32 %v472_v32, %v471_v28 }
  0x5a   : > { %v491_v39 = vadd.f32 %v490_v34, %v489_v30  ;;  %v465_v40 = vrot.slane %v464_v35, 1  ;;  %v483_v42 = vrot.slane %v482_v37, 1 }
  0x5b   : > { %v474_v41 = vrot.slane %v473_v36, 1 }
  0x5c   : > { %v492_v43 = vrot.slane %v491_v39, 1  ;;  %v466_v44 = vadd.f32 %v465_v40, %v464_v35  ;;  %v484_v46 = vadd.f32 %v483_v42, %v482_v37 }
  0x5d   : > { %v475_v45 = vadd.f32 %v474_v41, %v473_v36 }
  0x5e   : > { %v493_v47 = vadd.f32 %v492_v43, %v491_v39  ;;  %v494_v48 = vmul.f32 0.0625, %v466_v44  ;;  %v496_v50 = vmul.f32 0.0625, %v484_v46 }
  0x5f   : > { %v495_v49 = vmul.f32 0.0625, %v475_v45 }
  0x60   : > { %v497_v51 = vmul.f32 0.0625, %v493_v47  ;;  %v498_v52 = vadd.f32 1e-05, %v494_v48  ;;  %v500_v54 = vadd.f32 1e-05, %v496_v50 }
  0x61   : > { %v499_v53 = vadd.f32 1e-05, %v495_v49 }
  0x62   : > { %v501_v55 = vadd.f32 1e-05, %v497_v51  ;;  %1524 = vrsqrt.f32 %v498_v52 }
  0x63   : > { %1526 = vrsqrt.f32 %v499_v53 }
  0x64   : > { %1528 = vrsqrt.f32 %v500_v54 }
  0x65   : > { %1530 = vrsqrt.f32 %v501_v55 }
  0x6f   : > { %v1525_v3 = vpop.eup %1524 }
  0x70   : > { %v1527_v4 = vpop.eup %1526  ;;  %v506_v7 = vmul.f32 %v1525_v3, %v1970_v56  ;;  %v507_v16 = vmul.f32 %v1525_v3, %v1973_v57 }
  0x71   : > { %v1529_v5 = vpop.eup %1528  ;;  %v508_v8 = vmul.f32 %v1527_v4, %v1976_v58  ;;  %v509_v18 = vmul.f32 %v1527_v4, %v1979_v59 }
  0x72   : > { %v1531_v6 = vpop.eup %1530  ;;  %v510_v9 = vmul.f32 %v1529_v5, %v1982_v60  ;;  %v511_v19 = vmul.f32 %v1529_v5, %v1985_v61 }
  0x73   : > { %v512_v10 = vmul.f32 %v1531_v6, %v1988_v62  ;;  %v513_v58 = vmul.f32 %v1531_v6, %v1991_v63 }
  0xb4   : > { %v535_v11 = vpop.permute.xlu1 %534 }
  0xb5   : > { %v517_v12 = vpop.permute.xlu0 %516 }
  0xb6   : > { %v524_v13 = vmul.f32 %v517_v12, %v506_v7  ;;  %v526_v14 = vmul.f32 %v517_v12, %v508_v8  ;;  %v528_v15 = vmul.f32 %v517_v12, %v510_v9  ;;  %v530_v17 = vmul.f32 %v517_v12, %v512_v10 }
  0xb8   : > { %v542_v20 = vadd.f32 %v535_v11, %v524_v13  ;;  %v544_v56 = vadd.f32 %v535_v11, %v526_v14  ;;  %v546_v21 = vadd.f32 %v535_v11, %v528_v15  ;;  %v2025_v24 = vadd.f32 %v535_v11, %v530_v17  ;;  %v540_v26 = vpop.permute.xlu1 %539 }
  0xb9   : > { %v522_v60 = vpop.permute.xlu0 %521 }
  0xba   : > { %v558_v22 = vmul.f32 0.70710677, %v542_v20  ;;  %v560_v62 = vmul.f32 0.70710677, %v544_v56  ;;  %v525_v23 = vmul.f32 %v522_v60, %v507_v16  ;;  %v562_v25 = vmul.f32 0.70710677, %v546_v21 }
  0xbb   : > { %v527_v27 = vmul.f32 %v522_v60, %v509_v18  ;;  %v529_v57 = vmul.f32 %v522_v60, %v511_v19  ;;  %v531_v28 = vmul.f32 %v522_v60, %v513_v58  ;;  %v564_v31 = vmul.f32 0.70710677, %v2025_v24 }
  0xbc   : > { %v543_v29 = vadd.f32 %v540_v26, %v525_v23  ;;  %1532 = verf.f32 %v558_v22  ;;  %v550_v37 = vmul.f32 0.5, %v542_v20  ;;  %v552_v47 = vmul.f32 0.5, %v544_v56 }
  0xbd   : > { %v545_v59 = vadd.f32 %v540_v26, %v527_v27  ;;  %v547_v61 = vadd.f32 %v540_v26, %v529_v57  ;;  %1534 = verf.f32 %v560_v62  ;;  %v549_v32 = vadd.f32 %v540_v26, %v531_v28 }
  0xbe   : > { %v559_v30 = vmul.f32 0.70710677, %v543_v29  ;;  %1536 = verf.f32 %v562_v25  ;;  %v551_v45 = vmul.f32 0.5, %v543_v29  ;;  %v554_v54 = vmul.f32 0.5, %v546_v21 }
  0xbf   : > { %v561_v63 = vmul.f32 0.70710677, %v545_v59  ;;  %v563_v33 = vmul.f32 0.70710677, %v547_v61  ;;  %v565_v34 = vmul.f32 0.70710677, %v549_v32 }
  0xc0   : > { %1538 = verf.f32 %v559_v30  ;;  %v553_v53 = vmul.f32 0.5, %v545_v59  ;;  %v555_v7 = vmul.f32 0.5, %v547_v61  ;;  %v556_v8 = vmul.f32 0.5, %v2025_v24 }
  0xc1   : > { %1540 = verf.f32 %v561_v63  ;;  %v557_v12 = vmul.f32 0.5, %v549_v32 }
  0xc2   : > { %1542 = verf.f32 %v564_v31 }
  0xc3   : > { %1544 = verf.f32 %v563_v33 }
  0xc4   : > { %1546 = verf.f32 %v565_v34 }
  0xc9   : > { %v1533_v35 = vpop.eup %1532 }
  0xca   : > { %v1535_v36 = vpop.eup %1534  ;;  %v574_v39 = vadd.f32 1.0, %v1533_v35 }
  0xcb   : > { %v1537_v40 = vpop.eup %1536  ;;  %v576_v42 = vadd.f32 1.0, %v1535_v36 }
  0xcc   : > { %v582_v41 = vmul.f32 %v574_v39, %v550_v37  ;;  %v578_v51 = vadd.f32 1.0, %v1537_v40 }
  0xcd   : > { %v1539_v43 = vpop.eup %1538  ;;  %v584_v49 = vmul.f32 %v576_v42, %v552_v47 }
  0xce   : > { %v1541_v44 = vpop.eup %1540  ;;  %598 = vrot.lane.b32.xlu0 %v582_v41, %s1691_s14  ;;  %v575_v46 = vadd.f32 1.0, %v1539_v43  ;;  %v586_v3 = vmul.f32 %v578_v51, %v554_v54 }
  0xcf   : > { %v1543_v48 = vpop.eup %1542  ;;  %v577_v50 = vadd.f32 1.0, %v1541_v44 }
  0xd0   : > { %v583_v38 = vmul.f32 %v575_v46, %v551_v45  ;;  %v1545_v52 = vpop.eup %1544  ;;  %v580_v5 = vadd.f32 1.0, %v1543_v48 }
  0xd1   : > { %v585_v55 = vmul.f32 %v577_v50, %v553_v53  ;;  %v579_v4 = vadd.f32 1.0, %v1545_v52  ;;  %v1547_v6 = vpop.eup %1546 }
  0xd2   : > { %600 = vrot.lane.b32.xlu1 %v583_v38, %s1691_s14  ;;  %602 = vrot.lane.b32.xlu0 %v584_v49, %s1691_s14  ;;  %v588_v10 = vmul.f32 %v580_v5, %v556_v8  ;;  %v581_v11 = vadd.f32 1.0, %v1547_v6 }
  0xd3   : > { %v587_v9 = vmul.f32 %v579_v4, %v555_v7 }
  0xd4   : > { %v589_v13 = vmul.f32 %v581_v11, %v557_v12 }
  0xd6   : > { %604 = vrot.lane.b32.xlu1 %v585_v55, %s1691_s14  ;;  %606 = vrot.lane.b32.xlu0 %v586_v3, %s1691_s14 }
  0xda   : > { %608 = vrot.lane.b32.xlu1 %v587_v9, %s1691_s14  ;;  %610 = vrot.lane.b32.xlu0 %v588_v10, %s1691_s14 }
  0xde   : > { %612 = vrot.lane.b32.xlu1 %v589_v13, %s1691_s14 }
 0x140   : > { %v599_v14 = vpop.permute.xlu0 %598 }
 0x141   : > { %623 = vst.msk [vmem:[#allocation2 + $0x1] sm:$0xff] %vm622_vm6, %v599_v14 }
 0x144   : > { %v601_v15 = vpop.permute.xlu1 %600  ;;  %v603_v16 = vpop.permute.xlu0 %602 }
 0x145   : > { %624 = vst.msk [vmem:[#allocation2 + $0x9] sm:$0xff] %vm622_vm6, %v601_v15  ;;  %625 = vst.msk [vmem:[#allocation2 + $0x19] sm:$0xff] %vm622_vm6, %v603_v16 }
 0x148   : > { %v605_v17 = vpop.permute.xlu1 %604  ;;  %v607_v18 = vpop.permute.xlu0 %606 }
 0x149   : > { %626 = vst.msk [vmem:[#allocation2 + $0x21] sm:$0xff] %vm622_vm6, %v605_v17  ;;  %627 = vst.msk [vmem:[#allocation2 + $0x31] sm:$0xff] %vm622_vm6, %v607_v18 }
 0x14c   : > { %v609_v19 = vpop.permute.xlu1 %608  ;;  %v611_v20 = vpop.permute.xlu0 %610 }
 0x14d   : > { %628 = vst.msk [vmem:[#allocation2 + $0x39] sm:$0xff] %vm622_vm6, %v609_v19  ;;  %629 = vst.msk [vmem:[#allocation2 + $0x49] sm:$0xff] %vm622_vm6, %v611_v20 }
 0x150   : > { %v613_v56 = vpop.permute.xlu1 %612 }
 0x151   : > { %630 = vst.msk [vmem:[#allocation2 + $0x51] sm:$0xff] %vm622_vm6, %v613_v56 }
 0x152 LB: >> { %vm655_vm7 = vcmask 1043459   ;;  %vm652_vm8 = vcmask 1042434   ;;  %vm649_vm9 = vcmask 1041409   ;;  %v1692_v21 = vmov 0.0   ;;  %s639_s20 = scalar_lea.vmem [#allocation2], %s1680_s17  ;;  %s1693_s25 = smov 126   ;;  %s1680_s17 = sphi %s2057_s17, %s638_s17  }
 0x153   : >> { %1416 = vmatprep.subr.mxu0 %v1692_v21  ;;  %vm670_vm10 = vcmask 1044484   ;;  %vm685_vm11 = vcmask 1045509   ;;  %vm688_vm12 = vcmask 128002   ;;  %vm673_vm13 = vcmask 126977   ;;  %s1694_s23 = smov 127   ;;  %s815_s29 = scalar_lea.vmem [#allocation4], %s1680_s17 }
 0x154   : >> { %vm658_vm14 = vcmask 125952   ;;  %vm1695_vm15 = vmmov 0   ;;  %v1696_v63 = vmov 0   ;;  %vm712_vm1 = vcmask 1043456   ;;  %s638_s17 = sadd.s32 1, %s1680_s17  }
 0x155   : >> { %1426 = vmatprep.mubr.msk.f32.mxu0 %vm1695_vm15, %v1692_v21  ;;  %1548 = vset.pattern.permute.xlu0 %v1696_v63  ;;  %vm708_vm2 = vcmask 293888   ;;  %v1697_v44 = vmov 1966171168   ;;  %v790_v46 = vlaneseq  ;;  %vm816_vm3 = vcmask 122880   ;;  %p635_p11 = scmp.ge.s32.totalorder %s638_s17, 16  }
 0x156   : >> { %v788_v45 = vunpack.c.l.s4 %v1697_v44  ;;  %1550 = vset.pattern.permute.xlu1 (%p635_p11), %v1689_v0  ;;  %v831_v6 = vld [vmem:[%s2319_s6] sm:$0xff] (%p635_p11)  ;;  %v832_v8 = vld [vmem:[%s2319_s6 + $0x8] sm:$0xff] (%p635_p11) }
 0x157   : >> { %v791_v48 = vshrl.u32 %v790_v46, 7  ;;  %v829_v7 = vld [vmem:[%s2318_s5] sm:$0xff] (%p635_p11) }
 0x158   : >> { %v640_v58 = vld [vmem:[%s639_s20] sm:$0x7]  ;;  %v641_v60 = vld [vmem:[%s639_s20 + $0x18] sm:$0x7]  ;;  %v642_v22 = vld [vmem:[%s639_s20 + $0x30] sm:$0x7]  ;;  %v789_v47 = vunpack.c.0.s8 %v788_v45 }
 0x159   : >> { %v643_v62 = vld [vmem:[%s639_s20 + $0x48] sm:$0x7]  ;;  %v648_v23 = vrot.slane %v641_v60, 7  ;;  %v651_v24 = vrot.slane %v642_v22, 6 }
 0x15a   : >> { %v654_v25 = vrot.slane %v643_v62, 5  ;;  %v2091_v49 = vsub.s32 %v789_v47, %v791_v48 }
 0x15b   : >> { %v683_v26 = vsel %vm655_vm7, %v648_v23, %v640_v58  ;;  %v668_v27 = vsel %vm652_vm8, %v648_v23, %v640_v58  ;;  %v650_v57 = vsel %vm649_vm9, %v648_v23, %v640_v58 }
 0x15c   : >> { %v684_v28 = vsel %vm670_vm10, %v651_v24, %v683_v26  ;;  %v669_v29 = vsel %vm655_vm7, %v651_v24, %v668_v27  ;;  %v653_v59 = vsel %vm652_vm8, %v651_v24, %v650_v57 }
 0x15d   : >> { %v686_v61 = vsel %vm685_vm11, %v654_v25, %v684_v28  ;;  %v671_v30 = vsel %vm670_vm10, %v654_v25, %v669_v29  ;;  %v656_v31 = vsel %vm655_vm7, %v654_v25, %v653_v59 }
 0x15e   : >> { %694 = vrot.lane.b32.xlu0 %v686_v61, %s1693_s25  ;;  %675 = vrot.lane.b32.xlu1 %v671_v30, %s1694_s23  ;;  %689 = vst.msk [vmem:[#allocation3 + $0x16] sm:$0x3c] %vm688_vm12, %v686_v61 }
 0x15f   : >> { %674 = vst.msk [vmem:[#allocation3 + $0xb] sm:$0x1e] %vm673_vm13, %v671_v30 }
 0x160   : >> { %659 = vst.msk [vmem:[#allocation3] sm:$0xf] %vm658_vm14, %v656_v31 }
 0x162   : >> { %690 = vrot.lane.b32.xlu0 %v686_v61, %s1694_s23  ;;  %679 = vrot.lane.b32.xlu1 %v671_v30, %s1693_s25 }
 0x166   : >> { %664 = vrot.lane.b32.xlu0 %v656_v31, %s1693_s25  ;;  %660 = vrot.lane.b32.xlu1 %v656_v31, %s1694_s23 }
 0x16a   : >> { %705 = vperm.xlu0 %1548, %v1875_v2   ;;  %965 = vperm.xlu1 (%p635_p11), %1550, %v831_v6  }
 0x16e   : > { %1549 = vset.pattern.permute.xlu0 (%p635_p11), %v1689_v0  ;;  %970 = vperm.xlu1 (%p635_p11), %1550, %v832_v8  }
 0x16f   : > { %947 = vperm.xlu0 (%p635_p11), %1549, %v829_v7  }
 0x1d0   : >> { %v695_v32 = vpop.permute.xlu0 %694  ;;  %v676_v33 = vpop.permute.xlu1 %675 }
 0x1d1   : >> { %697 = vst.msk [vmem:[#allocation3 + $0x1e] sm:$0x3c] %vm688_vm12, %v695_v32 }
 0x1d2   : >> { %678 = vst.msk [vmem:[#allocation3 + $0xf] sm:$0x1e] %vm673_vm13, %v676_v33 }
 0x1d4   : >> { %v691_v34 = vpop.permute.xlu0 %690  ;;  %v680_v35 = vpop.permute.xlu1 %679 }
 0x1d5   : >> { %693 = vst.msk [vmem:[#allocation3 + $0x1a] sm:$0x3c] %vm688_vm12, %v691_v34 }
 0x1d6   : >> { %682 = vst.msk [vmem:[#allocation3 + $0x13] sm:$0x1e] %vm673_vm13, %v680_v35 }
 0x1d8   : >> { %v665_v36 = vpop.permute.xlu0 %664  ;;  %v702_v37 = vld [vmem:[#allocation3 + $0x20] sm:$0xf]  ;;  %v661_v39 = vpop.permute.xlu1 %660 }
 0x1d9   : >> { %667 = vst.msk [vmem:[#allocation3 + $0x8] sm:$0xf] %vm658_vm14, %v665_v36  ;;  %1417 = vmatpush3.msk.msra.mxu0 %vm712_vm1, %v702_v37  ;;  %663 = vst.msk [vmem:[#allocation3 + $0x4] sm:$0xf] %vm658_vm14, %v661_v39 }
 0x1da   : >> { %1418 = vmatprep.subr.mxu0 %v1692_v21 }
 0x1dc   : >> { %v701_v40 = vld [vmem:[#allocation3 + $0x18] sm:$0xff] }
 0x1dd   : >> { %1419 = vmatpush3.msra.mxu0 %v701_v40  ;;  %v700_v41 = vld [vmem:[#allocation3 + $0x10] sm:$0xff] }
 0x1de   : >> { %1420 = vmatprep.subr.mxu0 %v1692_v21 }
 0x1df   : >> { %1421 = vmatpush3.msra.mxu0 %v700_v41 }
 0x1e0   : >> { %1422 = vmatprep.subr.mxu0 %v1692_v21  ;;  %v699_v42 = vld [vmem:[#allocation3 + $0x8] sm:$0xff]  ;;  %v698_v43 = vld [vmem:[#allocation3] sm:$0xff] }
 0x1e1   : >> { %1423 = vmatpush3.msra.mxu0 %v699_v42 }
 0x1e2   : >> { %1424 = vmatprep.subr.mxu0 %v1692_v21 }
 0x1e3   : >> { %1425 = vmatpush3.msra.mxu0 %v698_v43 }
 0x1e4   : >> { %1427 = vmatmul.mubr.msk.f32.vlgmr.msra.gmra.mxu0 %vm708_vm2, %v1870_v1  ;;  %v830_v1 = vld [vmem:[%s2318_s5 + $0x8] sm:$0xff] (%p635_p11) }
 0x1e5   : >> { %v706_v38 = vpop.permute.xlu0 %705  ;;  %952 = vperm.xlu0 (%p635_p11), %1549, %v830_v1  }
 0x2a4   : >> { %v782_v50 = vpop.f32.mrf.mxu0 }
 0x2a5   : >> { %v783_v51 = vadd.f32 %v782_v50, %v706_v38 }
 0x2a6   : >> { %v1428_v52 = vpop.f32.mrf.mxu0 }
 0x2a7   : >> { %v793_v53 = vrot.slane %v783_v51, %v2091_v49 }
 0x2a9   : >> { %v794_v54 = vcombine.high %v793_v53, %v793_v53  ;;  %v801_v55 = vrot.slane %v793_v53, %v2091_v49 }
 0x2ab   : >> { %v808_v3 = vrot.slane %v794_v54, %v2091_v49  ;;  %v809_v4 = vcombine.high %v801_v55, %v801_v55  ;;  %817 = vst.msk [vmem:[%s815_s29] sm:$0x1] %vm816_vm3, %v801_v55  ;;  %637 = sbr.rel (!%p635_p11) target bundleno = 338 (0x152), region = 119 }
 0x2ad   : >> { %v810_v5 = vcombine.high %v808_v3, %v808_v3  ;;  %818 = vst.msk [vmem:[%s815_s29 + $0x10] sm:$0x1] %vm816_vm3, %v808_v3  ;;  %819 = vst.msk [vmem:[%s815_s29 + $0x20] sm:$0x1] %vm816_vm3, %v809_v4 }
 0x2af   : >> { %820 = vst.msk [vmem:[%s815_s29 + $0x30] sm:$0x1] %vm816_vm3, %v810_v5 }
 0x2b6   : > { %v821_v0 = vld [vmem:[#allocation4] sm:$0xff]  ;;  %v822_v2 = vld [vmem:[#allocation4 + $0x8] sm:$0xff]  ;;  %v823_v9 = vld [vmem:[#allocation4 + $0x10] sm:$0xff] }
 0x2b7   : > { %v824_v10 = vld [vmem:[#allocation4 + $0x18] sm:$0xff]  ;;  %v825_v11 = vld [vmem:[#allocation4 + $0x20] sm:$0xff]  ;;  %v826_v12 = vld [vmem:[#allocation4 + $0x28] sm:$0xff]  ;;  %v833_v13 = vsel %vm400_vm0, %v821_v0, 0.0  ;;  %v834_v14 = vsel %vm400_vm0, %v822_v2, 0.0  ;;  %v842_v15 = vsel %vm400_vm0, %v823_v9, 0.0 }
 0x2b8   : > { %v843_v16 = vsel %vm400_vm0, %v824_v10, 0.0  ;;  %v827_v17 = vld [vmem:[#allocation4 + $0x30] sm:$0xff]  ;;  %v828_v18 = vld [vmem:[#allocation4 + $0x38] sm:$0xff]  ;;  %v851_v19 = vsel %vm400_vm0, %v825_v11, 0.0  ;;  %v852_v20 = vsel %vm400_vm0, %v826_v12, 0.0  ;;  %v835_v56 = vadd.f32 %v834_v14, %v833_v13 }
 0x2b9   : > { %v844_v21 = vadd.f32 %v843_v16, %v842_v15  ;;  %v853_v58 = vadd.f32 %v852_v20, %v851_v19  ;;  %v860_v60 = vsel %vm400_vm0, %v827_v17, 0.0  ;;  %v861_v22 = vsel %vm400_vm0, %v828_v18, 0.0 }
 0x2ba   : > { %v836_v62 = vrot.slane %v835_v56, 4  ;;  %v862_v24 = vadd.f32 %v861_v22, %v860_v60 }
 0x2bb   : > { %v845_v23 = vrot.slane %v844_v21, 4  ;;  %v854_v25 = vrot.slane %v853_v58, 4 }
 0x2bc   : > { %v837_v26 = vadd.f32 %v836_v62, %v835_v56  ;;  %v863_v57 = vrot.slane %v862_v24, 4 }
 0x2bd   : > { %v846_v27 = vadd.f32 %v845_v23, %v844_v21  ;;  %v855_v28 = vadd.f32 %v854_v25, %v853_v58 }
 0x2be   : > { %v838_v29 = vrot.slane %v837_v26, 2  ;;  %v864_v61 = vadd.f32 %v863_v57, %v862_v24 }
 0x2bf   : > { %v847_v59 = vrot.slane %v846_v27, 2  ;;  %v856_v30 = vrot.slane %v855_v28, 2 }
 0x2c0   : > { %v839_v31 = vadd.f32 %v838_v29, %v837_v26  ;;  %v865_v32 = vrot.slane %v864_v61, 2 }
 0x2c1   : > { %v848_v63 = vadd.f32 %v847_v59, %v846_v27  ;;  %v857_v33 = vadd.f32 %v856_v30, %v855_v28 }
 0x2c2   : > { %v840_v34 = vrot.slane %v839_v31, 1  ;;  %v866_v36 = vadd.f32 %v865_v32, %v864_v61 }
 0x2c3   : > { %v849_v35 = vrot.slane %v848_v63, 1  ;;  %v858_v37 = vrot.slane %v857_v33, 1 }
 0x2c4   : > { %v841_v39 = vadd.f32 %v840_v34, %v839_v31  ;;  %v867_v41 = vrot.slane %v866_v36, 1 }
 0x2c5   : > { %v850_v40 = vadd.f32 %v849_v35, %v848_v63  ;;  %v859_v42 = vadd.f32 %v858_v37, %v857_v33 }
 0x2c6   : > { %v869_v43 = vmul.f32 0.0625, %v841_v39  ;;  %v868_v44 = vadd.f32 %v867_v41, %v866_v36 }
 0x2c7   : > { %v870_v45 = vmul.f32 0.0625, %v850_v40  ;;  %v871_v46 = vmul.f32 0.0625, %v859_v42 }
 0x2c8   : > { %v2126_v47 = vsub.f32 %v821_v0, %v869_v43  ;;  %v2128_v48 = vsub.f32 %v822_v2, %v869_v43  ;;  %v872_v38 = vmul.f32 0.0625, %v868_v44 }
 0x2c9   : > { %v2130_v50 = vsub.f32 %v823_v9, %v870_v45  ;;  %v2132_v51 = vsub.f32 %v824_v10, %v870_v45  ;;  %v2134_v52 = vsub.f32 %v825_v11, %v871_v46  ;;  %v2136_v53 = vsub.f32 %v826_v12, %v871_v46 }
 0x2ca   : > { %v881_v54 = vmul.f32 %v2126_v47, %v2126_v47  ;;  %v882_v55 = vmul.f32 %v2128_v48, %v2128_v48  ;;  %v2142_v3 = vsub.f32 %v827_v17, %v872_v38  ;;  %v2144_v4 = vsub.f32 %v828_v18, %v872_v38 }
 0x2cb   : > { %v883_v5 = vmul.f32 %v2130_v50, %v2130_v50  ;;  %v884_v6 = vmul.f32 %v2132_v51, %v2132_v51  ;;  %v885_v7 = vmul.f32 %v2134_v52, %v2134_v52  ;;  %v886_v8 = vmul.f32 %v2136_v53, %v2136_v53 }
 0x2cc   : > { %v889_v1 = vsel %vm400_vm0, %v881_v54, 0.0  ;;  %v890_v0 = vsel %vm400_vm0, %v882_v55, 0.0  ;;  %v887_v2 = vmul.f32 %v2142_v3, %v2142_v3  ;;  %v888_v9 = vmul.f32 %v2144_v4, %v2144_v4 }
 0x2cd   : > { %v898_v10 = vsel %vm400_vm0, %v883_v5, 0.0  ;;  %v899_v11 = vsel %vm400_vm0, %v884_v6, 0.0  ;;  %v907_v12 = vsel %vm400_vm0, %v885_v7, 0.0  ;;  %v908_v13 = vsel %vm400_vm0, %v886_v8, 0.0  ;;  %v966_v7 = vpop.permute.xlu1 %965  ;;  %v948_v8 = vpop.permute.xlu0 %947 }
 0x2ce   : > { %v891_v14 = vadd.f32 %v890_v0, %v889_v1  ;;  %v900_v15 = vadd.f32 %v899_v11, %v898_v10  ;;  %v909_v16 = vadd.f32 %v908_v13, %v907_v12  ;;  %v916_v17 = vsel %vm400_vm0, %v887_v2, 0.0 }
 0x2cf   : > { %v917_v18 = vsel %vm400_vm0, %v888_v9, 0.0 }
 0x2d0   : > { %v892_v19 = vrot.slane %v891_v14, 4  ;;  %v901_v20 = vrot.slane %v900_v15, 4  ;;  %v918_v56 = vadd.f32 %v917_v18, %v916_v17  ;;  %v910_v21 = vrot.slane %v909_v16, 4 }
 0x2d2   : > { %v893_v58 = vadd.f32 %v892_v19, %v891_v14  ;;  %v902_v60 = vadd.f32 %v901_v20, %v900_v15  ;;  %v919_v22 = vrot.slane %v918_v56, 4  ;;  %v911_v62 = vadd.f32 %v910_v21, %v909_v16 }
 0x2d4   : > { %v894_v23 = vrot.slane %v893_v58, 2  ;;  %v903_v24 = vrot.slane %v902_v60, 2  ;;  %v920_v25 = vadd.f32 %v919_v22, %v918_v56  ;;  %v912_v26 = vrot.slane %v911_v62, 2 }
 0x2d6   : > { %v895_v27 = vadd.f32 %v894_v23, %v893_v58  ;;  %v904_v57 = vadd.f32 %v903_v24, %v902_v60  ;;  %v921_v28 = vrot.slane %v920_v25, 2  ;;  %v913_v29 = vadd.f32 %v912_v26, %v911_v62 }
 0x2d8   : > { %v896_v59 = vrot.slane %v895_v27, 1  ;;  %v905_v61 = vrot.slane %v904_v57, 1  ;;  %v922_v30 = vadd.f32 %v921_v28, %v920_v25  ;;  %v914_v31 = vrot.slane %v913_v29, 1 }
 0x2da   : > { %v897_v63 = vadd.f32 %v896_v59, %v895_v27  ;;  %v906_v32 = vadd.f32 %v905_v61, %v904_v57  ;;  %v923_v33 = vrot.slane %v922_v30, 1  ;;  %v915_v34 = vadd.f32 %v914_v31, %v913_v29 }
 0x2dc   : > { %v925_v35 = vmul.f32 0.0625, %v897_v63  ;;  %v924_v36 = vadd.f32 %v923_v33, %v922_v30  ;;  %v926_v37 = vmul.f32 0.0625, %v906_v32  ;;  %v927_v39 = vmul.f32 0.0625, %v915_v34 }
 0x2de   : > { %v929_v40 = vadd.f32 1e-05, %v925_v35  ;;  %v928_v41 = vmul.f32 0.0625, %v924_v36  ;;  %v930_v42 = vadd.f32 1e-05, %v926_v37 }
 0x2df   : > { %v931_v43 = vadd.f32 1e-05, %v927_v39  ;;  %v2178_v39 = vld [vmem:[%s2320_s7] sm:$0xf] }
 0x2e0   : > { %1551 = vrsqrt.f32 %v929_v40  ;;  %v932_v44 = vadd.f32 1e-05, %v928_v41  ;;  %v2183_v40 = vld [vmem:[%s2321_s8] sm:$0xf] }
 0x2e1   : > { %1553 = vrsqrt.f32 %v930_v42 }
 0x2e2   : > { %1555 = vrsqrt.f32 %v931_v43 }
 0x2e3   : > { %1557 = vrsqrt.f32 %v932_v44 }
 0x2ed   : > { %v1552_v45 = vpop.eup %1551 }
 0x2ee   : > { %v1554_v46 = vpop.eup %1553  ;;  %v937_v55 = vmul.f32 %v1552_v45, %v2126_v47  ;;  %v938_v0 = vmul.f32 %v1552_v45, %v2128_v48 }
 0x2ef   : > { %v1556_v38 = vpop.eup %1555  ;;  %v939_v5 = vmul.f32 %v1554_v46, %v2130_v50  ;;  %v940_v2 = vmul.f32 %v1554_v46, %v2132_v51 }
 0x2f0   : > { %v1558_v54 = vpop.eup %1557  ;;  %v941_v6 = vmul.f32 %v1556_v38, %v2134_v52  ;;  %v955_v9 = vmul.f32 %v948_v8, %v937_v55  ;;  %v942_v12 = vmul.f32 %v1556_v38, %v2136_v53  ;;  %v953_v52 = vpop.permute.xlu0 %952 }
 0x2f1   : > { %v943_v1 = vmul.f32 %v1558_v54, %v2142_v3  ;;  %v957_v10 = vmul.f32 %v948_v8, %v939_v5  ;;  %v944_v13 = vmul.f32 %v1558_v54, %v2144_v4  ;;  %v956_v16 = vmul.f32 %v953_v52, %v938_v0  ;;  %v971_v3 = vpop.permute.xlu1 %970 }
 0x2f2   : > { %v959_v11 = vmul.f32 %v948_v8, %v941_v6  ;;  %v973_v47 = vadd.f32 %v966_v7, %v955_v9  ;;  %v958_v17 = vmul.f32 %v953_v52, %v940_v2  ;;  %v960_v18 = vmul.f32 %v953_v52, %v942_v12 }
 0x2f3   : > { %v975_v14 = vadd.f32 %v966_v7, %v957_v10  ;;  %v961_v15 = vmul.f32 %v948_v8, %v943_v1  ;;  %v962_v20 = vmul.f32 %v953_v52, %v944_v13  ;;  %v974_v51 = vadd.f32 %v971_v3, %v956_v16 }
 0x2f4   : > { %v977_v50 = vadd.f32 %v966_v7, %v959_v11  ;;  %v989_v19 = vmul.f32 0.70710677, %v973_v47  ;;  %v976_v56 = vadd.f32 %v971_v3, %v958_v17  ;;  %v978_v58 = vadd.f32 %v971_v3, %v960_v18 }
 0x2f5   : > { %v991_v48 = vmul.f32 0.70710677, %v975_v14  ;;  %v979_v53 = vadd.f32 %v966_v7, %v961_v15  ;;  %v990_v60 = vmul.f32 0.70710677, %v974_v51  ;;  %v980_v62 = vadd.f32 %v971_v3, %v962_v20 }
 0x2f6   : > { %v993_v21 = vmul.f32 0.70710677, %v977_v50  ;;  %1559 = verf.f32 %v989_v19  ;;  %v992_v4 = vmul.f32 0.70710677, %v976_v56  ;;  %v994_v22 = vmul.f32 0.70710677, %v978_v58 }
 0x2f7   : > { %1561 = verf.f32 %v991_v48  ;;  %v995_v23 = vmul.f32 0.70710677, %v979_v53  ;;  %v996_v24 = vmul.f32 0.70710677, %v980_v62  ;;  %v981_v27 = vmul.f32 0.5, %v973_v47 }
 0x2f8   : > { %1563 = verf.f32 %v993_v21  ;;  %v982_v31 = vmul.f32 0.5, %v974_v51  ;;  %v983_v32 = vmul.f32 0.5, %v975_v14  ;;  %v984_v42 = vmul.f32 0.5, %v976_v56 }
 0x2f9   : > { %1565 = verf.f32 %v990_v60  ;;  %v985_v43 = vmul.f32 0.5, %v977_v50  ;;  %v986_v55 = vmul.f32 0.5, %v978_v58  ;;  %v987_v5 = vmul.f32 0.5, %v979_v53 }
 0x2fa   : > { %1567 = verf.f32 %v992_v4  ;;  %v988_v1 = vmul.f32 0.5, %v980_v62 }
 0x2fb   : > { %1569 = verf.f32 %v994_v22 }
 0x2fc   : > { %1571 = verf.f32 %v995_v23 }
 0x2fd   : > { %1573 = verf.f32 %v996_v24 }
 0x303   : > { %v1560_v25 = vpop.eup %1559 }
 0x304   : > { %v1562_v26 = vpop.eup %1561  ;;  %v1005_v57 = vadd.f32 1.0, %v1560_v25 }
 0x305   : > { %v1564_v28 = vpop.eup %1563  ;;  %v1007_v61 = vadd.f32 1.0, %v1562_v26 }
 0x306   : > { %v1566_v29 = vpop.eup %1565  ;;  %v1013_v59 = vmul.f32 %v1005_v57, %v981_v27  ;;  %v1009_v37 = vadd.f32 1.0, %v1564_v28 }
 0x307   : > { %v1568_v30 = vpop.eup %1567  ;;  %v1006_v63 = vadd.f32 1.0, %v1566_v29  ;;  %v1015_v36 = vmul.f32 %v1007_v61, %v983_v32 }
 0x308   : > { %1029 = vrot.lane.b32.xlu0 %v1013_v59, %s1691_s14  ;;  %v1008_v34 = vadd.f32 1.0, %v1568_v30  ;;  %v1570_v35 = vpop.eup %1569  ;;  %v1017_v38 = vmul.f32 %v1009_v37, %v985_v43 }
 0x309   : > { %v1014_v33 = vmul.f32 %v1006_v63, %v982_v31  ;;  %v1572_v41 = vpop.eup %1571  ;;  %v1010_v45 = vadd.f32 1.0, %v1570_v35 }
 0x30a   : > { %v1016_v44 = vmul.f32 %v1008_v34, %v984_v42  ;;  %v1574_v46 = vpop.eup %1573  ;;  %v1011_v54 = vadd.f32 1.0, %v1572_v41 }
 0x30b   : > { %1031 = vrot.lane.b32.xlu1 %v1014_v33, %s1691_s14  ;;  %v1018_v6 = vmul.f32 %v1010_v45, %v986_v55  ;;  %v1012_v7 = vadd.f32 1.0, %v1574_v46 }
 0x30c   : > { %1033 = vrot.lane.b32.xlu0 %v1015_v36, %s1691_s14  ;;  %v1019_v8 = vmul.f32 %v1011_v54, %v987_v5 }
 0x30d   : > { %v1020_v0 = vmul.f32 %v1012_v7, %v988_v1 }
 0x30f   : > { %1035 = vrot.lane.b32.xlu1 %v1016_v44, %s1691_s14 }
 0x310   : > { %1037 = vrot.lane.b32.xlu0 %v1017_v38, %s1691_s14 }
 0x313   : > { %1039 = vrot.lane.b32.xlu1 %v1018_v6, %s1691_s14 }
 0x314   : > { %1041 = vrot.lane.b32.xlu0 %v1019_v8, %s1691_s14 }
 0x317   : > { %1043 = vrot.lane.b32.xlu1 %v1020_v0, %s1691_s14  ;;  %s2200_s14 = smov 0  }
 0x37a   : > { %v1030_v2 = vpop.permute.xlu0 %1029 }
 0x37b   : > { %1053 = vst.msk [vmem:[#allocation2 + $0x1] sm:$0xff] %vm622_vm6, %v1030_v2 }
 0x37d   : > { %v1032_v9 = vpop.permute.xlu1 %1031 }
 0x37e   : > { %1054 = vst.msk [vmem:[#allocation2 + $0x9] sm:$0xff] %vm622_vm6, %v1032_v9  ;;  %v1034_v10 = vpop.permute.xlu0 %1033 }
 0x37f   : > { %1055 = vst.msk [vmem:[#allocation2 + $0x19] sm:$0xff] %vm622_vm6, %v1034_v10 }
 0x381   : > { %v1036_v11 = vpop.permute.xlu1 %1035 }
 0x382   : > { %1056 = vst.msk [vmem:[#allocation2 + $0x21] sm:$0xff] %vm622_vm6, %v1036_v11  ;;  %v1038_v12 = vpop.permute.xlu0 %1037 }
 0x383   : > { %1057 = vst.msk [vmem:[#allocation2 + $0x31] sm:$0xff] %vm622_vm6, %v1038_v12 }
 0x385   : > { %v1040_v13 = vpop.permute.xlu1 %1039 }
 0x386   : > { %1058 = vst.msk [vmem:[#allocation2 + $0x39] sm:$0xff] %vm622_vm6, %v1040_v13  ;;  %v1042_v47 = vpop.permute.xlu0 %1041 }
 0x387   : > { %1059 = vst.msk [vmem:[#allocation2 + $0x49] sm:$0xff] %vm622_vm6, %v1042_v47 }
 0x389   : > { %v1044_v14 = vpop.permute.xlu1 %1043 }
 0x38a   : > { %1060 = vst.msk [vmem:[#allocation2 + $0x51] sm:$0xff] %vm622_vm6, %v1044_v14 }
 0x38b LB: >> { %v1698_v50 = vmov 0.0   ;;  %s1069_s26 = scalar_lea.vmem [#allocation2], %s1684_s14  ;;  %s1699_s19 = smov 126   ;;  %vm1701_vm4 = vmmov 0   ;;  %v1702_v22 = vmov 0   ;;  %s1684_s14 = sphi %s2200_s14, %s1068_s14  }
 0x38c   : >> { %1429 = vmatprep.subr.mxu0 %v1698_v50  ;;  %s1700_s28 = smov 127   ;;  %1439 = vmatprep.mubr.msk.f32.mxu0 %vm1701_vm4, %v1698_v50  ;;  %s1245_s20 = scalar_lea.vmem [#allocation4], %s1684_s14 }
 0x38d   : >> { %1575 = vset.pattern.permute.xlu0 %v1702_v22  ;;  %s1068_s14 = sadd.s32 1, %s1684_s14  }
 0x38e   : >> { %p1065_p12 = scmp.ge.s32.totalorder %s1068_s14, 16  }
 0x38f   : > { %v1259_v43 = vld [vmem:[%s1859_s27] sm:$0xff] (%p1065_p12)  ;;  %v1260_v46 = vld [vmem:[%s1859_s27 + $0x8] sm:$0xff] (%p1065_p12)  ;;  %v1261_v54 = vld [vmem:[%s1859_s27 + $0x10] sm:$0xff] (%p1065_p12)  ;;  %s1403_s17 = sshll.u32 (%p1065_p12), %s1777_s13, 10  ;;  %s1297_s25 = sshll.u32 (%p1065_p12), %s2055_s16, 4  ;;  %s2262_s25 = int_to_ptr.vmem [resolvable:$true] %s1297_s25 }
 0x390   : > { %v1263_v7 = vld [vmem:[%s1859_s27 + $0x20] sm:$0xff] (%p1065_p12)  ;;  %v1264_v1 = vld [vmem:[%s1859_s27 + $0x28] sm:$0xff] (%p1065_p12)  ;;  %v1265_v10 = vld [vmem:[%s1859_s27 + $0x30] sm:$0xff] (%p1065_p12)  ;;  %s2260_s29 = scalar_lea.hbm (%p1065_p12), %s2322_s9, %s1403_s17  ;;  %s1604_s24 = scalar_lea.vmem (%p1065_p12), %s2262_s25, 1024 }
 0x391   : >> { %v1070_v15 = vld [vmem:[%s1069_s26] sm:$0x7]  ;;  %v1071_v52 = vld [vmem:[%s1069_s26 + $0x18] sm:$0x7]  ;;  %v1072_v16 = vld [vmem:[%s1069_s26 + $0x30] sm:$0x7]  ;;  %p1605_p13 = scmp.ne.s32.totalorder (%p1065_p12), %s2262_s25, %s1604_s24 }
 0x392   : >> { %v1073_v17 = vld [vmem:[%s1069_s26 + $0x48] sm:$0x7]  ;;  %v1078_v18 = vrot.slane %v1071_v52, 7  ;;  %v1081_v3 = vrot.slane %v1072_v16, 6  ;;  %v1266_v13 = vld [vmem:[%s1859_s27 + $0x38] sm:$0xff] (%p1065_p12)  ;;  %p2334_p4 = scmp.ne.s32.totalorder (%p1065_p12), %s2330_s21, 0 }
 0x393   : >> { %v1084_v19 = vrot.slane %v1073_v17, 5  ;;  %s1703_s18 = smov (%p1065_p12), [#allocation8]  }
 0x394   : >> { %v1113_v48 = vsel %vm655_vm7, %v1078_v18, %v1070_v15  ;;  %v1098_v20 = vsel %vm652_vm8, %v1078_v18, %v1070_v15  ;;  %v1080_v51 = vsel %vm649_vm9, %v1078_v18, %v1070_v15  ;;  %p1606_p5 = pnand (%p1065_p12), %p1605_p13, %p2334_p4  ;;  %s1608_s14 = sshll.u32 (%p1065_p12), %s1703_s18, 4  ;;  %s1609_s14 = int_to_ptr.vmem [resolvable:$false] %s1608_s14 }
 0x395   : >> { %v1114_v56 = vsel %vm670_vm10, %v1081_v3, %v1113_v48  ;;  %v1099_v21 = vsel %vm655_vm7, %v1081_v3, %v1098_v20  ;;  %v1083_v58 = vsel %vm652_vm8, %v1081_v3, %v1080_v51  ;;  %s1610_s26 = scalar_lea.vmem (%p1065_p12), %s1609_s14, 2048  ;;  %p1611_p8 = scmp.lt.s32.totalorder (%p1065_p12), %s2262_s25, %s1609_s14 }
 0x396   : >> { %v1116_v53 = vsel %vm685_vm11, %v1084_v19, %v1114_v56  ;;  %v1101_v60 = vsel %vm670_vm10, %v1084_v19, %v1099_v21  ;;  %v1086_v4 = vsel %vm655_vm7, %v1084_v19, %v1083_v58  ;;  %p1607_p7 = pneg (%p1065_p12), %p1606_p5  ;;  %p1612_p10 = scmp.lt.s32.totalorder (%p1065_p12), %s1610_s26, %s1604_s24 }
 0x397   : >> { %1124 = vrot.lane.b32.xlu0 %v1116_v53, %s1699_s19  ;;  %1119 = vst.msk [vmem:[#allocation3 + $0x16] sm:$0x3c] %vm688_vm12, %v1116_v53  ;;  %1105 = vrot.lane.b32.xlu1 %v1101_v60, %s1700_s28 }
 0x398   : >> { %1104 = vst.msk [vmem:[#allocation3 + $0xb] sm:$0x1e] %vm673_vm13, %v1101_v60  ;;  %p1613_p0 = por (%p1065_p12), %p1612_p10, %p1611_p8 }
 0x399   : >> { %1089 = vst.msk [vmem:[#allocation3] sm:$0xf] %vm658_vm14, %v1086_v4 }
 0x39a   : > { %p1614_p2 = pnand (%p1065_p12), %p1613_p0, %p1607_p7 }
 0x39b   : >> { %1120 = vrot.lane.b32.xlu0 %v1116_v53, %s1700_s28  ;;  %1109 = vrot.lane.b32.xlu1 %v1101_v60, %s1699_s19 }
 0x39f   : >> { %1094 = vrot.lane.b32.xlu0 %v1086_v4, %s1699_s19  ;;  %1090 = vrot.lane.b32.xlu1 %v1086_v4, %s1700_s28 }
 0x3a3   : >> { %1135 = vperm.xlu0 %1575, %v2183_v40  }
 0x409   : >> { %v1125_v62 = vpop.permute.xlu0 %1124  ;;  %v1106_v23 = vpop.permute.xlu1 %1105 }
 0x40a   : >> { %1127 = vst.msk [vmem:[#allocation3 + $0x1e] sm:$0x3c] %vm688_vm12, %v1125_v62 }
 0x40b   : >> { %1108 = vst.msk [vmem:[#allocation3 + $0xf] sm:$0x1e] %vm673_vm13, %v1106_v23 }
 0x40d   : >> { %v1121_v24 = vpop.permute.xlu0 %1120  ;;  %v1110_v25 = vpop.permute.xlu1 %1109 }
 0x40e   : >> { %1123 = vst.msk [vmem:[#allocation3 + $0x1a] sm:$0x3c] %vm688_vm12, %v1121_v24 }
 0x40f   : >> { %1112 = vst.msk [vmem:[#allocation3 + $0x13] sm:$0x1e] %vm673_vm13, %v1110_v25 }
 0x411   : >> { %v1095_v26 = vpop.permute.xlu0 %1094  ;;  %v1132_v27 = vld [vmem:[#allocation3 + $0x20] sm:$0xf]  ;;  %v1091_v57 = vpop.permute.xlu1 %1090 }
 0x412   : >> { %1097 = vst.msk [vmem:[#allocation3 + $0x8] sm:$0xf] %vm658_vm14, %v1095_v26  ;;  %1430 = vmatpush3.msk.msra.mxu0 %vm712_vm1, %v1132_v27  ;;  %1093 = vst.msk [vmem:[#allocation3 + $0x4] sm:$0xf] %vm658_vm14, %v1091_v57 }
 0x413   : >> { %1431 = vmatprep.subr.mxu0 %v1698_v50 }
 0x415   : >> { %v1131_v28 = vld [vmem:[#allocation3 + $0x18] sm:$0xff] }
 0x416   : >> { %1432 = vmatpush3.msra.mxu0 %v1131_v28  ;;  %v1130_v29 = vld [vmem:[#allocation3 + $0x10] sm:$0xff] }
 0x417   : >> { %1433 = vmatprep.subr.mxu0 %v1698_v50 }
 0x418   : >> { %1434 = vmatpush3.msra.mxu0 %v1130_v29 }
 0x419   : >> { %1435 = vmatprep.subr.mxu0 %v1698_v50  ;;  %v1129_v59 = vld [vmem:[#allocation3 + $0x8] sm:$0xff]  ;;  %v1128_v61 = vld [vmem:[#allocation3] sm:$0xff] }
 0x41a   : >> { %1436 = vmatpush3.msra.mxu0 %v1129_v59 }
 0x41b   : >> { %1437 = vmatprep.subr.mxu0 %v1698_v50 }
 0x41c   : >> { %1438 = vmatpush3.msra.mxu0 %v1128_v61 }
 0x41d   : >> { %1440 = vmatmul.mubr.msk.f32.vlgmr.msra.gmra.mxu0 %vm708_vm2, %v2178_v39  ;;  %v1262_v39 = vld [vmem:[%s1859_s27 + $0x18] sm:$0xff] (%p1065_p12)  ;;  %s1284_s27 = scalar_lea.sflag (%p1065_p12), [#allocation7], %s1853_s11 }
 0x41e   : >> { %v1136_v30 = vpop.permute.xlu0 %1135 }
 0x4dd   : >> { %v1212_v31 = vpop.f32.mrf.mxu0 }
 0x4de   : >> { %v1213_v63 = vadd.f32 %v1212_v31, %v1136_v30 }
 0x4df   : >> { %v1441_v32 = vpop.f32.mrf.mxu0 }
 0x4e0   : >> { %v1223_v33 = vrot.slane %v1213_v63, %v2091_v49 }
 0x4e2   : >> { %v1224_v34 = vcombine.high %v1223_v33, %v1223_v33  ;;  %v1231_v35 = vrot.slane %v1223_v33, %v2091_v49 }
 0x4e4   : >> { %v1238_v36 = vrot.slane %v1224_v34, %v2091_v49  ;;  %v1239_v37 = vcombine.high %v1231_v35, %v1231_v35  ;;  %1247 = vst.msk [vmem:[%s1245_s20] sm:$0x1] %vm816_vm3, %v1231_v35  ;;  %1067 = sbr.rel (!%p1065_p12) target bundleno = 907 (0x38b), region = 130 }
 0x4e6   : >> { %v1240_v41 = vcombine.high %v1238_v36, %v1238_v36  ;;  %1248 = vst.msk [vmem:[%s1245_s20 + $0x10] sm:$0x1] %vm816_vm3, %v1238_v36  ;;  %1249 = vst.msk [vmem:[%s1245_s20 + $0x20] sm:$0x1] %vm816_vm3, %v1239_v37 }
 0x4e8   : >> { %1250 = vst.msk [vmem:[%s1245_s20 + $0x30] sm:$0x1] %vm816_vm3, %v1240_v41 }
 0x4ef   : > { %v1251_v42 = vld [vmem:[#allocation4] sm:$0xff]  ;;  %v1252_v44 = vld [vmem:[#allocation4 + $0x8] sm:$0xff]  ;;  %v1253_v38 = vld [vmem:[#allocation4 + $0x10] sm:$0xff] }
 0x4f0   : > { %v1267_v45 = vadd.f32 %v1259_v43, %v1251_v42  ;;  %v1268_v55 = vadd.f32 %v1260_v46, %v1252_v44  ;;  %v1269_v5 = vadd.f32 %v1261_v54, %v1253_v38  ;;  %v1254_v49 = vld [vmem:[#allocation4 + $0x18] sm:$0xff]  ;;  %v1255_v40 = vld [vmem:[#allocation4 + $0x20] sm:$0xff]  ;;  %v1256_v8 = vld [vmem:[#allocation4 + $0x28] sm:$0xff] }
 0x4f1   : > { %v1270_v6 = vadd.f32 %v1262_v39, %v1254_v49  ;;  %v1271_v0 = vadd.f32 %v1263_v7, %v1255_v40  ;;  %v1272_v2 = vadd.f32 %v1264_v1, %v1256_v8  ;;  %v1257_v9 = vld [vmem:[#allocation4 + $0x30] sm:$0xff]  ;;  %v1258_v11 = vld [vmem:[#allocation4 + $0x38] sm:$0xff] }
 0x4f2   : > { %1275 = vst.msk [vmem:[%s2055_s16] sm:$0xff] %vm400_vm0, %v1267_v45  ;;  %1276 = vst.msk [vmem:[%s2055_s16 + $0x8] sm:$0xff] %vm400_vm0, %v1268_v55  ;;  %v1273_v12 = vadd.f32 %v1265_v10, %v1257_v9  ;;  %v1274_v47 = vadd.f32 %v1266_v13, %v1258_v11 }
 0x4f3   : > { %1277 = vst.msk [vmem:[%s2055_s16 + $0x10] sm:$0xff] %vm400_vm0, %v1269_v5  ;;  %1278 = vst.msk [vmem:[%s2055_s16 + $0x18] sm:$0xff] %vm400_vm0, %v1270_v6 }
 0x4f4   : > { %1279 = vst.msk [vmem:[%s2055_s16 + $0x20] sm:$0xff] %vm400_vm0, %v1271_v0  ;;  %1280 = vst.msk [vmem:[%s2055_s16 + $0x28] sm:$0xff] %vm400_vm0, %v1272_v2 }
 0x4f5   : > { %1281 = vst.msk [vmem:[%s2055_s16 + $0x30] sm:$0xff] %vm400_vm0, %v1273_v12  ;;  %1282 = vst.msk [vmem:[%s2055_s16 + $0x38] sm:$0xff] %vm400_vm0, %v1274_v47 }
 0x4f6   : > { %1617 = shalt.err (!%p1614_p2)
}
 0x4f7   : > { %s1618_s16 = scalar_lea.hbm %s2260_s29, 1024  ;;  %s1622_s20 = scalar_lea.hbm %s2322_s9, 2048 }
 0x4f8   : > { %p1619_p9 = scmp.ne.s32.totalorder %s2260_s29, %s1618_s16  ;;  %p1623_p6 = scmp.lt.s32.totalorder %s2260_s29, %s2322_s9 }
 0x4f9   : > { %p1624_p11 = scmp.lt.s32.totalorder %s1622_s20, %s1618_s16 }
 0x4fa   : > { %p1620_p1 = pnand %p1619_p9, %p2334_p4 }
 0x4fb   : > { %p1625_p12 = por %p1624_p11, %p1623_p6 }
 0x4fc   : > { %p1621_p3 = pneg %p1620_p1 }
 0x4fe   : > { %p1626_p13 = pnand %p1625_p12, %p1621_p3 }
 0x500   : > { %1629 = shalt.err (!%p1626_p13)
}
 0x501   : > { %s1704_s23 = smov 128   ;;  %s1705_s24 = smov 8  }
 0x502   : > { %1444 = dma.vmem_to_hbm [thread:$0]  (%p2334_p4), %s2262_s25, 1024, %s2260_s29, %s1284_s27, %s1704_s23, %s1704_s23, %s1705_s24  }
 0x503 PF: > { %s1312_s18 = sand.u32 1, %s1664_s30   ;;  %p2335_p5 = scmp.ne.s32.totalorder %s2331_s22, 0 }
 0x504   : > { %p2336_p7 = scmp.ge.s32.totalorder %s1676_s12, 2  ;;  %s1313_s14 = scalar_lea.sflag [#allocation7], %s1312_s18 }
 0x506   : > { %p1451_p8 = pnand %p2336_p7, %p2335_p5 }
 0x508   : > { %p1452_p10 = pneg %p1451_p8 }
 0x50a   : > { %1659 = dma.done.wait (%p1452_p10), %s1313_s14, 1024  }
 0x50b   : > { %1661 = vsyncadd (%p1452_p10), %s1313_s14, 4294966272  ;;  %s2337_s26 = sld [smem:[#allocation11_spill]]  ;;  %p22_p0 = scmp.ge.s32.totalorder %s1781_s15, 4  }
 0x50c   : > { %s2338_s11 = sld [smem:[#allocation12_spill]]  ;;  %s2339_s30 = smov %s1668_s10 }
 0x50d   : > { %s2341_s12 = smov %s1781_s15  ;;  %24 = sbr.rel (!%p22_p0) target bundleno = 5 (0x5), region = 141 }
 0x511   : > { %s2340_s10 = smov %s2337_s26 }
 0x512   :  { %1318 = vsyncpa [#allocation6], 1 }
 0x513   :  { %1320 = vsyncpa [#allocation6 + $0x1], 1 }
 0x514   :  { %1321 = vsyncpa [#allocation7], 1 }
 0x515   :  { %1323 = vsyncpa [#allocation7 + $0x1], 1 }

</bundles_post_ra>
